<compile_context>
chip_gen: v6e
topology: v6e:2x2x1
jax: 0.10.0
libtpu: 0.0.40
codegen_flags: <defaults>
</compile_context>

<pallas_src>
import functools
import math

import jax
import jax.numpy as jnp
from jax import lax
from jax.experimental import pallas as pl
from jax.experimental.pallas import tpu as pltpu


def _sparse_attn_kernel(xq_ref, xkv_ref, pm_ref, wq_ref, bq_ref, wv_ref, bv_ref,
                        wp_ref, bp_ref, o_ref, acc_ref, *, W, E, H, d_k, bt):
    f32 = jnp.float32
    cdt = wq_ref.dtype                        # matmul compute dtype (bf16)
    k_idx = pl.program_id(1)
    b_idx = pl.program_id(2)
    n_k = pl.num_programs(1)

    # --- K-tiled accumulation:
    #   attend[t*W+w, e] = sum_{t'} position_mask[t', w, t] * x[b, t', e]
    # TODO(synk): if position_mask is structurally one-hot, this dense matmul
    # could become a scalar-prefetched DMA row-gather (O(T*W*E) work, O(T*W)
    # index bytes); kept dense because the module allows arbitrary mask weights.
    part = jnp.dot(pm_ref[...], xkv_ref[...], preferred_element_type=f32)  # (bt*W, E)

    @pl.when(k_idx == 0)
    def _init():
        acc_ref[b_idx] = part

    @pl.when(k_idx > 0)
    def _accumulate():
        acc_ref[b_idx] = acc_ref[b_idx] + part

    # --- all remaining work happens once per (i, b), on the last reduction step
    @pl.when(k_idx == n_k - 1)
    def _finalize():
        # Head-segment indicators built in-kernel from iota compares.  0/1 values
        # are exact in bf16, and there is no HBM traffic for index structure.
        e_ids = lax.broadcasted_iota(jnp.int32, (E, H), 0)
        h_ids = lax.broadcasted_iota(jnp.int32, (E, H), 1)
        seg_eh = ((e_ids >= h_ids * d_k) & (e_ids < (h_ids + 1) * d_k)).astype(cdt)
        h_ids2 = lax.broadcasted_iota(jnp.int32, (H, E), 0)
        e_ids2 = lax.broadcasted_iota(jnp.int32, (H, E), 1)
        seg_he = ((e_ids2 >= h_ids2 * d_k) & (e_ids2 < (h_ids2 + 1) * d_k)).astype(cdt)

        attend_c = acc_ref[b_idx].astype(cdt)                     # (bt*W, E), single cast
        xq = xq_ref[b_idx]                                        # (bt, E)

        q = jnp.dot(xq, wq_ref[...], preferred_element_type=f32) + bq_ref[...]         # (bt, E)
        kk = jnp.dot(attend_c, wq_ref[...], preferred_element_type=f32) + bq_ref[...]  # (bt*W, E)
        vv = jnp.dot(attend_c, wv_ref[...], preferred_element_type=f32) + bv_ref[...]  # (bt*W, E)

        # scores[t, w, h] = <q[t], kk[t*W+w]> restricted to head h's columns, / sqrt(E)
        qk = (kk.reshape(bt, W, E) * q[:, None, :]).reshape(bt * W, E)
        s = jnp.dot(qk.astype(cdt), seg_eh,
                    preferred_element_type=f32) * (1.0 / math.sqrt(E))       # (bt*W, H)

        # softmax over the window axis per (token, head) — matches F.softmax(dim=-1)
        s3 = s.reshape(bt, W, H)
        s3 = s3 - jnp.max(s3, axis=1, keepdims=True)
        p3 = jnp.exp(s3)
        p3 = p3 * pl.reciprocal(jnp.sum(p3, axis=1, keepdims=True), approx=True)

        # ctx[t, h*d_k + d] = sum_w p[t, w, h] * vv[t*W+w, h*d_k + d]
        pe = jnp.dot(p3.reshape(bt * W, H).astype(cdt), seg_he,
                     preferred_element_type=f32)                             # (bt*W, E)
        ctx = jnp.sum((pe * vv).reshape(bt, W, E), axis=1)                   # (bt, E)

        o_ref[b_idx] = (jnp.dot(ctx.astype(cdt), wp_ref[...],
                                preferred_element_type=f32)
                        + bp_ref[...]).astype(o_ref.dtype)


def _pick_tiles(n, limit, mults):
    """Divisors of n that are <= limit, preferring the given multiples, descending."""
    for m in mults:
        cands = [d for d in range(min(limit, n), 0, -1) if n % d == 0 and d % m == 0]
        if cands:
            return cands
    return [n]


def sparse_attention_pallas(x, position_mask, wq, bq, wv, bv, wp, bp, num_heads,
                            *, seq_block=128, k_block=512,
                            compute_dtype=jnp.bfloat16,
                            vmem_target_bytes=48 << 20):
    B, T, E = x.shape
    W = position_mask.shape[1]
    H = num_heads
    d_k = E // H
    f32 = jnp.float32
    cdt = compute_dtype
    csz = jnp.dtype(cdt).itemsize

    # pm_r[t*W + w, t'] = position_mask[t', w, t]
    # TODO(synk): if the mask is static across calls, hoist/cache this transpose
    # (an extra O(T^2*W) pass) and store it int8 (v5e/v6e) or fp8 (v7x) to halve
    # the dominant HBM stream.
    pm_r = jnp.transpose(position_mask, (2, 1, 0)).reshape(T * W, T).astype(cdt)

    # PyTorch splits E as (d_k, H) (head index fastest) for q/k/v; permute the
    # projection-weight columns so head h occupies contiguous columns
    # [h*d_k, (h+1)*d_k):  new column j = h*d_k + d  <-  old column d*H + h.
    jj = jnp.arange(E)
    inv = (jj % d_k) * H + (jj // d_k)
    wq_tp = wq.T[:, inv].astype(cdt)
    bq_p = bq[inv].reshape(1, E).astype(f32)
    wv_tp = wv.T[:, inv].astype(cdt)
    bv_p = bv[inv].reshape(1, E).astype(f32)
    # The module's final head-concat is already in h*d_k + d order, so Wp / bp
    # need no column permutation.
    wp_t = wp.T.astype(cdt)
    bp_p = bp.reshape(1, E).astype(f32)

    # --- tile sizes: prefer bt % 16 == 0 (bf16 sublane packing), tk % 128 == 0
    # (lane-dense pm tiles); shrink until the VMEM estimate fits the target.
    # HBM traffic model: pm is read exactly once; x is re-read once per
    # sequence tile (n_t * B*T*E bytes) for the K-tiled attend reduction, in
    # exchange for bounded VMEM and no per-batch pm re-streaming.
    bt_cands = _pick_tiles(T, seq_block, (16, 8, 1))
    tk_cands = _pick_tiles(T, k_block, (128, 16, 8, 1))

    def vmem_estimate(bt_, tk_, w_bufs):
        pm_b = 2 * (bt_ * W) * tk_ * csz           # double-buffered pm tile
        xkv_b = 2 * tk_ * E * csz                  # double-buffered x k-tile
        xq_b = 2 * B * bt_ * E * csz               # double-buffered q rows (all batches)
        w_b = w_bufs * (3 * E * E * csz + 3 * E * 4)
        out_b = 2 * B * bt_ * E * 4                # f32 output block
        acc_b = B * (bt_ * W) * E * 4              # f32 accumulator scratch
        tmp_b = 12 * (bt_ * W) * E * 4             # kk/vv/qk/pe/... temporaries
        return pm_b + xkv_b + xq_b + w_b + out_b + acc_b + tmp_b + (2 << 20)

    bi = ki = 0
    bt, tk = bt_cands[0], tk_cands[0]
    while vmem_estimate(bt, tk, 1) > vmem_target_bytes:
        if bi + 1 < len(bt_cands):
            bi += 1
            bt = bt_cands[bi]
        elif ki + 1 < len(tk_cands):
            ki += 1
            tk = tk_cands[ki]
        else:
            # TODO(synk): pathological T (e.g. prime) with huge B*E may still not
            # fit; padding T to a tileable length would be required in that case.
            break
    n_t = T // bt
    n_k = T // tk
    vmem_limit = int(min(max(vmem_estimate(bt, tk, 2) * 1.25, 8 << 20), 127 << 20))

    kernel = functools.partial(_sparse_attn_kernel, W=W, E=E, H=H, d_k=d_k, bt=bt)
    x_c = x.astype(cdt)

    def build(single_buffer_consts):
        cmode = dict(pipeline_mode=pl.Buffered(1)) if single_buffer_consts else {}

        def const(shape):
            return pl.BlockSpec(shape, lambda i, k, b: (0,) * len(shape), **cmode)

        return pl.pallas_call(
            kernel,
            out_shape=jax.ShapeDtypeStruct((B, T, E), f32),
            grid=(n_t, n_k, B),
            in_specs=[
                pl.BlockSpec((B, bt, E), lambda i, k, b: (0, i, 0)),             # x rows (q)
                pl.BlockSpec((pl.Squeezed(), tk, E), lambda i, k, b: (b, k, 0)),  # x k-tile
                pl.BlockSpec((bt * W, tk), lambda i, k, b: (i, k)),               # pm tile
                const((E, E)),                                                    # Wq^T
                const((1, E)),                                                    # bq
                const((E, E)),                                                    # Wv^T
                const((1, E)),                                                    # bv
                const((E, E)),                                                    # Wp^T
                const((1, E)),                                                    # bp
            ],
            out_specs=pl.BlockSpec((B, bt, E), lambda i, k, b: (0, i, 0)),
            scratch_shapes=[pltpu.VMEM((B, bt * W, E), f32)],
            compiler_params=pltpu.CompilerParams(
                dimension_semantics=("parallel", "arbitrary", "arbitrary"),
                vmem_limit_bytes=vmem_limit),
        )

    args = (x_c, x_c, pm_r, wq_tp, bq_p, wv_tp, bv_p, wp_t, bp_p)
    try:
        return build(True)(*args)
    except Exception:
        # TODO(synk): pipeline_mode=pl.Buffered(1) not supported by this JAX
        # build; fall back to default double-buffered constant operands.
        return build(False)(*args)


def ref_forward(x, pm, wq, bq, wv, bv, wp, bp, H):
    """Pure-JAX mirror of the PyTorch forward (for verification)."""
    B, T, E = x.shape
    W = pm.shape[1]
    d_k = E // H
    hp = lax.Precision.HIGHEST
    attend = jnp.matmul(jnp.swapaxes(x, 1, 2), pm.reshape(T, W * T), precision=hp)
    attend = attend.reshape(B, E, W, T).transpose(0, 3, 2, 1)            # (B,T,W,E)
    q = jnp.matmul(x, wq.T, precision=hp) + bq
    k = jnp.matmul(attend, wq.T, precision=hp) + bq
    v = jnp.matmul(attend, wv.T, precision=hp) + bv
    query = q.reshape(B, T, 1, d_k, H).transpose(0, 4, 1, 2, 3)          # (B,H,T,1,d_k)
    key = k.reshape(B, T, W, d_k, H).transpose(0, 4, 1, 2, 3)            # (B,H,T,W,d_k)
    value = v.reshape(B, T, W, d_k, H).transpose(0, 4, 1, 2, 3)
    scores = jnp.matmul(query, jnp.swapaxes(key, -2, -1), precision=hp) / math.sqrt(E)
    scores = jax.nn.softmax(scores, axis=-1)
    out = jnp.matmul(scores, value, precision=hp)                        # (B,H,T,1,d_k)
    out = out[:, :, :, 0, :].transpose(0, 2, 1, 3).reshape(B, T, E)
    return jnp.matmul(out, wp.T, precision=hp) + bp


if __name__ == "__main__":
    B, T, E, H, W = 2, 8, 32, 4, 4
    key = jax.random.PRNGKey(0)
    kx, kpm, k1, k2, k3, k4, k5, k6 = jax.random.split(key, 8)

    x = jax.random.normal(kx, (B, T, E), jnp.float32)
    position_mask = jax.random.uniform(kpm, (T, W, T), jnp.float32)

    bound = 1.0 / math.sqrt(E)   # PyTorch nn.Linear default init range
    wq = jax.random.uniform(k1, (E, E), jnp.float32, -bound, bound)
    bq = jax.random.uniform(k2, (E,), jnp.float32, -bound, bound)
    wv = jax.random.uniform(k3, (E, E), jnp.float32, -bound, bound)
    bv = jax.random.uniform(k4, (E,), jnp.float32, -bound, bound)
    wp = jax.random.uniform(k5, (E, E), jnp.float32, -bound, bound)
    bp = jax.random.uniform(k6, (E,), jnp.float32, -bound, bound)

    out = sparse_attention_pallas(x, position_mask, wq, bq, wv, bv, wp, bp, H)
    out = jax.block_until_ready(out)

    # The kernel feeds the MXU bf16 operands with f32 accumulation, so compare
    # against the f32 reference evaluated on bf16-rounded inputs (tolerance
    # covers the remaining bf16 intermediate casts inside the kernel).
    rd = lambda a: a.astype(jnp.bfloat16).astype(jnp.float32)
    ref = ref_forward(rd(x), rd(position_mask), rd(wq), bq, rd(wv), bv, rd(wp), bp, H)

    assert out.shape == (B, T, E)
    if not jnp.allclose(out, ref, atol=5e-2, rtol=5e-2):
        max_err = float(jnp.max(jnp.abs(out - ref)))
        raise AssertionError(f"Pallas kernel mismatch, max abs err = {max_err}")
    print("KERNEL_OK")
</pallas_src>

<mosaic_0001>
module attributes {stable_mosaic.version = 11 : i64} {
  func.func @_sparse_attn_kernel(%arg0: i32, %arg1: i32, %arg2: i32, %arg3: memref<2x8x32xbf16, #tpu.memory_space<vmem>>, %arg4: memref<1x8x32xbf16, #tpu.memory_space<vmem>>, %arg5: memref<32x8xbf16, #tpu.memory_space<vmem>>, %arg6: memref<32x32xbf16, #tpu.memory_space<vmem>>, %arg7: memref<1x32xf32, #tpu.memory_space<vmem>>, %arg8: memref<32x32xbf16, #tpu.memory_space<vmem>>, %arg9: memref<1x32xf32, #tpu.memory_space<vmem>>, %arg10: memref<32x32xbf16, #tpu.memory_space<vmem>>, %arg11: memref<1x32xf32, #tpu.memory_space<vmem>>, %arg12: memref<2x8x32xf32, #tpu.memory_space<vmem>>, %arg13: memref<2x32x32xf32, #tpu.memory_space<vmem>>) attributes {dimension_semantics = [#tpu.dimension_semantics<parallel>, #tpu.dimension_semantics<arbitrary>, #tpu.dimension_semantics<arbitrary>], iteration_bounds = array<i64: 1, 1, 2>, scalar_prefetch = 0 : i64, scratch_operands = 1 : i64, tpu.core_type = #tpu.core_type<tc>, window_params = [{transform_indices = @transform_0, window_bounds = array<i64: 2, 8, 32>}, {transform_indices = @transform_1, window_bounds = array<i64: 1, 8, 32>}, {transform_indices = @transform_2, window_bounds = array<i64: 32, 8>}, {pipeline_mode = #tpu.pipeline_mode<synchronous>, transform_indices = @transform_3, window_bounds = array<i64: 32, 32>}, {pipeline_mode = #tpu.pipeline_mode<synchronous>, transform_indices = @transform_4, window_bounds = array<i64: 1, 32>}, {pipeline_mode = #tpu.pipeline_mode<synchronous>, transform_indices = @transform_5, window_bounds = array<i64: 32, 32>}, {pipeline_mode = #tpu.pipeline_mode<synchronous>, transform_indices = @transform_6, window_bounds = array<i64: 1, 32>}, {pipeline_mode = #tpu.pipeline_mode<synchronous>, transform_indices = @transform_7, window_bounds = array<i64: 32, 32>}, {pipeline_mode = #tpu.pipeline_mode<synchronous>, transform_indices = @transform_8, window_bounds = array<i64: 1, 32>}, {transform_indices = @transform_9, window_bounds = array<i64: 2, 8, 32>}]} {
    %c0 = arith.constant 0 : index
    %c0_0 = arith.constant 0 : index
    %0 = vector.load %arg5[%c0, %c0_0] : memref<32x8xbf16, #tpu.memory_space<vmem>>, vector<32x8xbf16>
    %c0_1 = arith.constant 0 : index
    %c0_2 = arith.constant 0 : index
    %c0_3 = arith.constant 0 : index
    %1 = vector.load %arg4[%c0_1, %c0_2, %c0_3] : memref<1x8x32xbf16, #tpu.memory_space<vmem>>, vector<1x8x32xbf16>
    %2 = vector.shape_cast %1 : vector<1x8x32xbf16> to vector<8x32xbf16>
    %cst = arith.constant dense<0.000000e+00> : vector<32x32xf32>
    %3 = tpu.matmul %0, %2, %cst {dimension_numbers = #tpu.dot_dimension_numbers<[1], [0], [0], [1], [0, 0, 1, 1], [], []>} : vector<32x8xbf16>, vector<8x32xbf16>, vector<32x32xf32> -> vector<32x32xf32>
    %c0_i32 = arith.constant 0 : i32
    %4 = arith.cmpi eq, %arg1, %c0_i32 : i32
    %5 = arith.extui %4 : i1 to i32
    %c0_i32_4 = arith.constant 0 : i32
    %6 = arith.cmpi ne, %5, %c0_i32_4 : i32
    scf.if %6 {
      %13 = arith.index_cast %arg2 : i32 to index
      %c0_9 = arith.constant 0 : index
      %c0_10 = arith.constant 0 : index
      %14 = vector.load %arg13[%13, %c0_9, %c0_10] : memref<2x32x32xf32, #tpu.memory_space<vmem>>, vector<1x32x32xf32>
      %15 = vector.shape_cast %14 : vector<1x32x32xf32> to vector<32x32xf32>
      %16 = vector.shape_cast %3 : vector<32x32xf32> to vector<1x32x32xf32>
      tpu.vector_store %arg13[%13, %c0_9, %c0_10], %16 {strides = array<i32>} : memref<2x32x32xf32, #tpu.memory_space<vmem>>, vector<1x32x32xf32>,
    } else {
    }
    %c0_i32_5 = arith.constant 0 : i32
    %7 = arith.cmpi sgt, %arg1, %c0_i32_5 : i32
    %8 = arith.extui %7 : i1 to i32
    %c0_i32_6 = arith.constant 0 : i32
    %9 = arith.cmpi ne, %8, %c0_i32_6 : i32
    scf.if %9 {
      %13 = arith.index_cast %arg2 : i32 to index
      %c0_9 = arith.constant 0 : index
      %c0_10 = arith.constant 0 : index
      %14 = vector.load %arg13[%13, %c0_9, %c0_10] : memref<2x32x32xf32, #tpu.memory_space<vmem>>, vector<1x32x32xf32>
      %15 = vector.shape_cast %14 : vector<1x32x32xf32> to vector<32x32xf32>
      %16 = arith.addf %15, %3 : vector<32x32xf32>
      %17 = arith.index_cast %arg2 : i32 to index
      %c0_11 = arith.constant 0 : index
      %c0_12 = arith.constant 0 : index
      %18 = vector.load %arg13[%17, %c0_11, %c0_12] : memref<2x32x32xf32, #tpu.memory_space<vmem>>, vector<1x32x32xf32>
      %19 = vector.shape_cast %18 : vector<1x32x32xf32> to vector<32x32xf32>
      %20 = vector.shape_cast %16 : vector<32x32xf32> to vector<1x32x32xf32>
      tpu.vector_store %arg13[%17, %c0_11, %c0_12], %20 {strides = array<i32>} : memref<2x32x32xf32, #tpu.memory_space<vmem>>, vector<1x32x32xf32>,
    } else {
    }
    %c0_i32_7 = arith.constant 0 : i32
    %10 = arith.cmpi eq, %arg1, %c0_i32_7 : i32
    %11 = arith.extui %10 : i1 to i32
    %c0_i32_8 = arith.constant 0 : i32
    %12 = arith.cmpi ne, %11, %c0_i32_8 : i32
    scf.if %12 {
      %13 = tpu.iota {dimensions = array<i32: 0>} : vector<32x4xi32>
      %14 = tpu.iota {dimensions = array<i32: 1>} : vector<32x4xi32>
      %c8_i32 = arith.constant 8 : i32
      %15 = vector.broadcast %c8_i32 : i32 to vector<32x4xi32>
      %16 = arith.muli %14, %15 : vector<32x4xi32>
      %17 = arith.cmpi sge, %13, %16 : vector<32x4xi32>
      %c1_i32 = arith.constant 1 : i32
      %18 = vector.broadcast %c1_i32 : i32 to vector<32x4xi32>
      %19 = arith.addi %14, %18 : vector<32x4xi32>
      %c8_i32_9 = arith.constant 8 : i32
      %20 = vector.broadcast %c8_i32_9 : i32 to vector<32x4xi32>
      %21 = arith.muli %19, %20 : vector<32x4xi32>
      %22 = arith.cmpi slt, %13, %21 : vector<32x4xi32>
      %23 = arith.andi %17, %22 : vector<32x4xi1>
      %24 = arith.extui %23 : vector<32x4xi1> to vector<32x4xi32>
      %25 = arith.sitofp %24 : vector<32x4xi32> to vector<32x4xf32>
      %26 = arith.truncf %25 : vector<32x4xf32> to vector<32x4xbf16>
      %27 = tpu.iota {dimensions = array<i32: 0>} : vector<4x32xi32>
      %28 = tpu.iota {dimensions = array<i32: 1>} : vector<4x32xi32>
      %c8_i32_10 = arith.constant 8 : i32
      %29 = vector.broadcast %c8_i32_10 : i32 to vector<4x32xi32>
      %30 = arith.muli %27, %29 : vector<4x32xi32>
      %31 = arith.cmpi sge, %28, %30 : vector<4x32xi32>
      %c1_i32_11 = arith.constant 1 : i32
      %32 = vector.broadcast %c1_i32_11 : i32 to vector<4x32xi32>
      %33 = arith.addi %27, %32 : vector<4x32xi32>
      %c8_i32_12 = arith.constant 8 : i32
      %34 = vector.broadcast %c8_i32_12 : i32 to vector<4x32xi32>
      %35 = arith.muli %33, %34 : vector<4x32xi32>
      %36 = arith.cmpi slt, %28, %35 : vector<4x32xi32>
      %37 = arith.andi %31, %36 : vector<4x32xi1>
      %38 = arith.extui %37 : vector<4x32xi1> to vector<4x32xi32>
      %39 = arith.sitofp %38 : vector<4x32xi32> to vector<4x32xf32>
      %40 = arith.truncf %39 : vector<4x32xf32> to vector<4x32xbf16>
      %41 = arith.index_cast %arg2 : i32 to index
      %c0_13 = arith.constant 0 : index
      %c0_14 = arith.constant 0 : index
      %42 = vector.load %arg13[%41, %c0_13, %c0_14] : memref<2x32x32xf32, #tpu.memory_space<vmem>>, vector<1x32x32xf32>
      %43 = vector.shape_cast %42 : vector<1x32x32xf32> to vector<32x32xf32>
      %44 = arith.truncf %43 : vector<32x32xf32> to vector<32x32xbf16>
      %45 = arith.index_cast %arg2 : i32 to index
      %c0_15 = arith.constant 0 : index
      %c0_16 = arith.constant 0 : index
      %46 = vector.load %arg3[%45, %c0_15, %c0_16] : memref<2x8x32xbf16, #tpu.memory_space<vmem>>, vector<1x8x32xbf16>
      %47 = vector.shape_cast %46 : vector<1x8x32xbf16> to vector<8x32xbf16>
      %c0_17 = arith.constant 0 : index
      %c0_18 = arith.constant 0 : index
      %48 = vector.load %arg6[%c0_17, %c0_18] : memref<32x32xbf16, #tpu.memory_space<vmem>>, vector<32x32xbf16>
      %cst_19 = arith.constant dense<0.000000e+00> : vector<8x32xf32>
      %49 = tpu.matmul %47, %48, %cst_19 {dimension_numbers = #tpu.dot_dimension_numbers<[1], [0], [0], [1], [0, 0, 1, 1], [], []>} : vector<8x32xbf16>, vector<32x32xbf16>, vector<8x32xf32> -> vector<8x32xf32>
      %c0_20 = arith.constant 0 : index
      %c0_21 = arith.constant 0 : index
      %50 = vector.load %arg7[%c0_20, %c0_21] : memref<1x32xf32, #tpu.memory_space<vmem>>, vector<1x32xf32>
      %51 = vector.broadcast %50 : vector<1x32xf32> to vector<8x32xf32>
      %52 = arith.addf %49, %51 : vector<8x32xf32>
      %c0_22 = arith.constant 0 : index
      %c0_23 = arith.constant 0 : index
      %53 = vector.load %arg6[%c0_22, %c0_23] : memref<32x32xbf16, #tpu.memory_space<vmem>>, vector<32x32xbf16>
      %cst_24 = arith.constant dense<0.000000e+00> : vector<32x32xf32>
      %54 = tpu.matmul %44, %53, %cst_24 {dimension_numbers = #tpu.dot_dimension_numbers<[1], [0], [0], [1], [0, 0, 1, 1], [], []>} : vector<32x32xbf16>, vector<32x32xbf16>, vector<32x32xf32> -> vector<32x32xf32>
      %c0_25 = arith.constant 0 : index
      %c0_26 = arith.constant 0 : index
      %55 = vector.load %arg7[%c0_25, %c0_26] : memref<1x32xf32, #tpu.memory_space<vmem>>, vector<1x32xf32>
      %56 = vector.broadcast %55 : vector<1x32xf32> to vector<32x32xf32>
      %57 = arith.addf %54, %56 : vector<32x32xf32>
      %c0_27 = arith.constant 0 : index
      %c0_28 = arith.constant 0 : index
      %58 = vector.load %arg8[%c0_27, %c0_28] : memref<32x32xbf16, #tpu.memory_space<vmem>>, vector<32x32xbf16>
      %cst_29 = arith.constant dense<0.000000e+00> : vector<32x32xf32>
      %59 = tpu.matmul %44, %58, %cst_29 {dimension_numbers = #tpu.dot_dimension_numbers<[1], [0], [0], [1], [0, 0, 1, 1], [], []>} : vector<32x32xbf16>, vector<32x32xbf16>, vector<32x32xf32> -> vector<32x32xf32>
      %c0_30 = arith.constant 0 : index
      %c0_31 = arith.constant 0 : index
      %60 = vector.load %arg9[%c0_30, %c0_31] : memref<1x32xf32, #tpu.memory_space<vmem>>, vector<1x32xf32>
      %61 = vector.broadcast %60 : vector<1x32xf32> to vector<32x32xf32>
      %62 = arith.addf %59, %61 : vector<32x32xf32>
      %63 = vector.shape_cast %57 : vector<32x32xf32> to vector<8x4x32xf32>
      %64 = vector.shape_cast %52 : vector<8x32xf32> to vector<8x1x32xf32>
      %65 = vector.broadcast %64 : vector<8x1x32xf32> to vector<8x4x32xf32>
      %66 = arith.mulf %63, %65 : vector<8x4x32xf32>
      %67 = vector.shape_cast %66 : vector<8x4x32xf32> to vector<32x32xf32>
      %68 = arith.truncf %67 : vector<32x32xf32> to vector<32x32xbf16>
      %cst_32 = arith.constant dense<0.000000e+00> : vector<32x4xf32>
      %69 = tpu.matmul %68, %26, %cst_32 {dimension_numbers = #tpu.dot_dimension_numbers<[1], [0], [0], [1], [0, 0, 1, 1], [], []>} : vector<32x32xbf16>, vector<32x4xbf16>, vector<32x4xf32> -> vector<32x4xf32>
      %cst_33 = arith.constant 0.176776692 : f32
      %70 = vector.broadcast %cst_33 : f32 to vector<32x4xf32>
      %71 = arith.mulf %69, %70 : vector<32x4xf32>
      %72 = vector.shape_cast %71 : vector<32x4xf32> to vector<8x4x4xf32>
      %cst_34 = arith.constant dense<0xFF800000> : vector<8x4xf32>
      %73 = vector.multi_reduction <maximumf>, %72, %cst_34 [1] : vector<8x4x4xf32> to vector<8x4xf32>
      %74 = vector.shape_cast %73 : vector<8x4xf32> to vector<8x1x4xf32>
      %75 = vector.broadcast %74 : vector<8x1x4xf32> to vector<8x4x4xf32>
      %76 = arith.subf %72, %75 : vector<8x4x4xf32>
      %77 = math.exp %76 : vector<8x4x4xf32>
      %cst_35 = arith.constant dense<0.000000e+00> : vector<8x4xf32>
      %78 = vector.multi_reduction <add>, %77, %cst_35 [1] : vector<8x4x4xf32> to vector<8x4xf32>
      %79 = vector.shape_cast %78 : vector<8x4xf32> to vector<8x1x4xf32>
      %80 = tpu.reciprocal %79 {approx = true} : vector<8x1x4xf32> -> vector<8x1x4xf32>
      %81 = vector.broadcast %80 : vector<8x1x4xf32> to vector<8x4x4xf32>
      %82 = arith.mulf %77, %81 : vector<8x4x4xf32>
      %83 = vector.shape_cast %82 : vector<8x4x4xf32> to vector<32x4xf32>
      %84 = arith.truncf %83 : vector<32x4xf32> to vector<32x4xbf16>
      %cst_36 = arith.constant dense<0.000000e+00> : vector<32x32xf32>
      %85 = tpu.matmul %84, %40, %cst_36 {dimension_numbers = #tpu.dot_dimension_numbers<[1], [0], [0], [1], [0, 0, 1, 1], [], []>} : vector<32x4xbf16>, vector<4x32xbf16>, vector<32x32xf32> -> vector<32x32xf32>
      %86 = arith.mulf %85, %62 : vector<32x32xf32>
      %87 = vector.shape_cast %86 : vector<32x32xf32> to vector<8x4x32xf32>
      %cst_37 = arith.constant dense<0.000000e+00> : vector<8x32xf32>
      %88 = vector.multi_reduction <add>, %87, %cst_37 [1] : vector<8x4x32xf32> to vector<8x32xf32>
      %89 = arith.truncf %88 : vector<8x32xf32> to vector<8x32xbf16>
      %c0_38 = arith.constant 0 : index
      %c0_39 = arith.constant 0 : index
      %90 = vector.load %arg10[%c0_38, %c0_39] : memref<32x32xbf16, #tpu.memory_space<vmem>>, vector<32x32xbf16>
      %cst_40 = arith.constant dense<0.000000e+00> : vector<8x32xf32>
      %91 = tpu.matmul %89, %90, %cst_40 {dimension_numbers = #tpu.dot_dimension_numbers<[1], [0], [0], [1], [0, 0, 1, 1], [], []>} : vector<8x32xbf16>, vector<32x32xbf16>, vector<8x32xf32> -> vector<8x32xf32>
      %c0_41 = arith.constant 0 : index
      %c0_42 = arith.constant 0 : index
      %92 = vector.load %arg11[%c0_41, %c0_42] : memref<1x32xf32, #tpu.memory_space<vmem>>, vector<1x32xf32>
      %93 = vector.broadcast %92 : vector<1x32xf32> to vector<8x32xf32>
      %94 = arith.addf %91, %93 : vector<8x32xf32>
      %95 = arith.index_cast %arg2 : i32 to index
      %c0_43 = arith.constant 0 : index
      %c0_44 = arith.constant 0 : index
      %96 = vector.load %arg12[%95, %c0_43, %c0_44] : memref<2x8x32xf32, #tpu.memory_space<vmem>>, vector<1x8x32xf32>
      %97 = vector.shape_cast %96 : vector<1x8x32xf32> to vector<8x32xf32>
      %98 = vector.shape_cast %94 : vector<8x32xf32> to vector<1x8x32xf32>
      tpu.vector_store %arg12[%95, %c0_43, %c0_44], %98 {strides = array<i32>} : memref<2x8x32xf32, #tpu.memory_space<vmem>>, vector<1x8x32xf32>,
    } else {
    }
    return
  }
  func.func @transform_0(%arg0: i32, %arg1: i32, %arg2: i32) -> (i32, i32, i32) {
    %c0_i32 = arith.constant 0 : i32
    %c0_i32_0 = arith.constant 0 : i32
    %c0_i32_1 = arith.constant 0 : i32
    return %c0_i32, %arg0, %c0_i32_0 : i32, i32, i32
  }
  func.func @transform_1(%arg0: i32, %arg1: i32, %arg2: i32) -> (i32, i32, i32) {
    %c0_i32 = arith.constant 0 : i32
    %c0_i32_0 = arith.constant 0 : i32
    return %arg2, %arg1, %c0_i32 : i32, i32, i32
  }
  func.func @transform_2(%arg0: i32, %arg1: i32, %arg2: i32) -> (i32, i32) {
    %c0_i32 = arith.constant 0 : i32
    return %arg0, %arg1 : i32, i32
  }
  func.func @transform_3(%arg0: i32, %arg1: i32, %arg2: i32) -> (i32, i32) {
    %c0_i32 = arith.constant 0 : i32
    %c0_i32_0 = arith.constant 0 : i32
    %c0_i32_1 = arith.constant 0 : i32
    return %c0_i32, %c0_i32_0 : i32, i32
  }
  func.func @transform_4(%arg0: i32, %arg1: i32, %arg2: i32) -> (i32, i32) {
    %c0_i32 = arith.constant 0 : i32
    %c0_i32_0 = arith.constant 0 : i32
    %c0_i32_1 = arith.constant 0 : i32
    return %c0_i32, %c0_i32_0 : i32, i32
  }
  func.func @transform_5(%arg0: i32, %arg1: i32, %arg2: i32) -> (i32, i32) {
    %c0_i32 = arith.constant 0 : i32
    %c0_i32_0 = arith.constant 0 : i32
    %c0_i32_1 = arith.constant 0 : i32
    return %c0_i32, %c0_i32_0 : i32, i32
  }
  func.func @transform_6(%arg0: i32, %arg1: i32, %arg2: i32) -> (i32, i32) {
    %c0_i32 = arith.constant 0 : i32
    %c0_i32_0 = arith.constant 0 : i32
    %c0_i32_1 = arith.constant 0 : i32
    return %c0_i32, %c0_i32_0 : i32, i32
  }
  func.func @transform_7(%arg0: i32, %arg1: i32, %arg2: i32) -> (i32, i32) {
    %c0_i32 = arith.constant 0 : i32
    %c0_i32_0 = arith.constant 0 : i32
    %c0_i32_1 = arith.constant 0 : i32
    return %c0_i32, %c0_i32_0 : i32, i32
  }
  func.func @transform_8(%arg0: i32, %arg1: i32, %arg2: i32) -> (i32, i32) {
    %c0_i32 = arith.constant 0 : i32
    %c0_i32_0 = arith.constant 0 : i32
    %c0_i32_1 = arith.constant 0 : i32
    return %c0_i32, %c0_i32_0 : i32, i32
  }
  func.func @transform_9(%arg0: i32, %arg1: i32, %arg2: i32) -> (i32, i32, i32) {
    %c0_i32 = arith.constant 0 : i32
    %c0_i32_0 = arith.constant 0 : i32
    %c0_i32_1 = arith.constant 0 : i32
    return %c0_i32, %arg0, %c0_i32_0 : i32, i32, i32
  }
}

module attributes {stable_mosaic.version = 11 : i64} {
  func.func @_sparse_attn_kernel(%arg0: i32, %arg1: i32, %arg2: i32, %arg3: memref<2x8x32xbf16, #tpu.memory_space<vmem>>, %arg4: memref<1x8x32xbf16, #tpu.memory_space<vmem>>, %arg5: memref<32x8xbf16, #tpu.memory_space<vmem>>, %arg6: memref<32x32xbf16, #tpu.memory_space<vmem>>, %arg7: memref<1x32xf32, #tpu.memory_space<vmem>>, %arg8: memref<32x32xbf16, #tpu.memory_space<vmem>>, %arg9: memref<1x32xf32, #tpu.memory_space<vmem>>, %arg10: memref<32x32xbf16, #tpu.memory_space<vmem>>, %arg11: memref<1x32xf32, #tpu.memory_space<vmem>>, %arg12: memref<2x8x32xf32, #tpu.memory_space<vmem>>, %arg13: memref<2x32x32xf32, #tpu.memory_space<vmem>>) attributes {dimension_semantics = [#tpu.dimension_semantics<parallel>, #tpu.dimension_semantics<arbitrary>, #tpu.dimension_semantics<arbitrary>], iteration_bounds = array<i64: 1, 1, 2>, scalar_prefetch = 0 : i64, scratch_operands = 1 : i64, tpu.core_type = #tpu.core_type<tc>, window_params = [{transform_indices = @transform_0, window_bounds = array<i64: 2, 8, 32>}, {transform_indices = @transform_1, window_bounds = array<i64: 1, 8, 32>}, {transform_indices = @transform_2, window_bounds = array<i64: 32, 8>}, {pipeline_mode = #tpu.pipeline_mode<synchronous>, transform_indices = @transform_3, window_bounds = array<i64: 32, 32>}, {pipeline_mode = #tpu.pipeline_mode<synchronous>, transform_indices = @transform_4, window_bounds = array<i64: 1, 32>}, {pipeline_mode = #tpu.pipeline_mode<synchronous>, transform_indices = @transform_5, window_bounds = array<i64: 32, 32>}, {pipeline_mode = #tpu.pipeline_mode<synchronous>, transform_indices = @transform_6, window_bounds = array<i64: 1, 32>}, {pipeline_mode = #tpu.pipeline_mode<synchronous>, transform_indices = @transform_7, window_bounds = array<i64: 32, 32>}, {pipeline_mode = #tpu.pipeline_mode<synchronous>, transform_indices = @transform_8, window_bounds = array<i64: 1, 32>}, {transform_indices = @transform_9, window_bounds = array<i64: 2, 8, 32>}]} {
    %c0 = arith.constant 0 : index
    %c0_0 = arith.constant 0 : index
    %0 = vector.load %arg5[%c0, %c0_0] : memref<32x8xbf16, #tpu.memory_space<vmem>>, vector<32x8xbf16>
    %c0_1 = arith.constant 0 : index
    %c0_2 = arith.constant 0 : index
    %c0_3 = arith.constant 0 : index
    %1 = vector.load %arg4[%c0_1, %c0_2, %c0_3] : memref<1x8x32xbf16, #tpu.memory_space<vmem>>, vector<1x8x32xbf16>
    %2 = vector.shape_cast %1 : vector<1x8x32xbf16> to vector<8x32xbf16>
    %cst = arith.constant dense<0.000000e+00> : vector<32x32xf32>
    %3 = tpu.matmul %0, %2, %cst {dimension_numbers = #tpu.dot_dimension_numbers<[1], [0], [0], [1], [0, 0, 1, 1], [], []>} : vector<32x8xbf16>, vector<8x32xbf16>, vector<32x32xf32> -> vector<32x32xf32>
    %c0_i32 = arith.constant 0 : i32
    %4 = arith.cmpi eq, %arg1, %c0_i32 : i32
    %5 = arith.extui %4 : i1 to i32
    %c0_i32_4 = arith.constant 0 : i32
    %6 = arith.cmpi ne, %5, %c0_i32_4 : i32
    scf.if %6 {
      %13 = arith.index_cast %arg2 : i32 to index
      %c0_9 = arith.constant 0 : index
      %c0_10 = arith.constant 0 : index
      %14 = vector.load %arg13[%13, %c0_9, %c0_10] : memref<2x32x32xf32, #tpu.memory_space<vmem>>, vector<1x32x32xf32>
      %15 = vector.shape_cast %14 : vector<1x32x32xf32> to vector<32x32xf32>
      %16 = vector.shape_cast %3 : vector<32x32xf32> to vector<1x32x32xf32>
      tpu.vector_store %arg13[%13, %c0_9, %c0_10], %16 {strides = array<i32>} : memref<2x32x32xf32, #tpu.memory_space<vmem>>, vector<1x32x32xf32>,
    } else {
    }
    %c0_i32_5 = arith.constant 0 : i32
    %7 = arith.cmpi sgt, %arg1, %c0_i32_5 : i32
    %8 = arith.extui %7 : i1 to i32
    %c0_i32_6 = arith.constant 0 : i32
    %9 = arith.cmpi ne, %8, %c0_i32_6 : i32
    scf.if %9 {
      %13 = arith.index_cast %arg2 : i32 to index
      %c0_9 = arith.constant 0 : index
      %c0_10 = arith.constant 0 : index
      %14 = vector.load %arg13[%13, %c0_9, %c0_10] : memref<2x32x32xf32, #tpu.memory_space<vmem>>, vector<1x32x32xf32>
      %15 = vector.shape_cast %14 : vector<1x32x32xf32> to vector<32x32xf32>
      %16 = arith.addf %15, %3 : vector<32x32xf32>
      %17 = arith.index_cast %arg2 : i32 to index
      %c0_11 = arith.constant 0 : index
      %c0_12 = arith.constant 0 : index
      %18 = vector.load %arg13[%17, %c0_11, %c0_12] : memref<2x32x32xf32, #tpu.memory_space<vmem>>, vector<1x32x32xf32>
      %19 = vector.shape_cast %18 : vector<1x32x32xf32> to vector<32x32xf32>
      %20 = vector.shape_cast %16 : vector<32x32xf32> to vector<1x32x32xf32>
      tpu.vector_store %arg13[%17, %c0_11, %c0_12], %20 {strides = array<i32>} : memref<2x32x32xf32, #tpu.memory_space<vmem>>, vector<1x32x32xf32>,
    } else {
    }
    %c0_i32_7 = arith.constant 0 : i32
    %10 = arith.cmpi eq, %arg1, %c0_i32_7 : i32
    %11 = arith.extui %10 : i1 to i32
    %c0_i32_8 = arith.constant 0 : i32
    %12 = arith.cmpi ne, %11, %c0_i32_8 : i32
    scf.if %12 {
      %13 = tpu.iota {dimensions = array<i32: 0>} : vector<32x4xi32>
      %14 = tpu.iota {dimensions = array<i32: 1>} : vector<32x4xi32>
      %c8_i32 = arith.constant 8 : i32
      %15 = vector.broadcast %c8_i32 : i32 to vector<32x4xi32>
      %16 = arith.muli %14, %15 : vector<32x4xi32>
      %17 = arith.cmpi sge, %13, %16 : vector<32x4xi32>
      %c1_i32 = arith.constant 1 : i32
      %18 = vector.broadcast %c1_i32 : i32 to vector<32x4xi32>
      %19 = arith.addi %14, %18 : vector<32x4xi32>
      %c8_i32_9 = arith.constant 8 : i32
      %20 = vector.broadcast %c8_i32_9 : i32 to vector<32x4xi32>
      %21 = arith.muli %19, %20 : vector<32x4xi32>
      %22 = arith.cmpi slt, %13, %21 : vector<32x4xi32>
      %23 = arith.andi %17, %22 : vector<32x4xi1>
      %24 = arith.extui %23 : vector<32x4xi1> to vector<32x4xi32>
      %25 = arith.sitofp %24 : vector<32x4xi32> to vector<32x4xf32>
      %26 = arith.truncf %25 : vector<32x4xf32> to vector<32x4xbf16>
      %27 = tpu.iota {dimensions = array<i32: 0>} : vector<4x32xi32>
      %28 = tpu.iota {dimensions = array<i32: 1>} : vector<4x32xi32>
      %c8_i32_10 = arith.constant 8 : i32
      %29 = vector.broadcast %c8_i32_10 : i32 to vector<4x32xi32>
      %30 = arith.muli %27, %29 : vector<4x32xi32>
      %31 = arith.cmpi sge, %28, %30 : vector<4x32xi32>
      %c1_i32_11 = arith.constant 1 : i32
      %32 = vector.broadcast %c1_i32_11 : i32 to vector<4x32xi32>
      %33 = arith.addi %27, %32 : vector<4x32xi32>
      %c8_i32_12 = arith.constant 8 : i32
      %34 = vector.broadcast %c8_i32_12 : i32 to vector<4x32xi32>
      %35 = arith.muli %33, %34 : vector<4x32xi32>
      %36 = arith.cmpi slt, %28, %35 : vector<4x32xi32>
      %37 = arith.andi %31, %36 : vector<4x32xi1>
      %38 = arith.extui %37 : vector<4x32xi1> to vector<4x32xi32>
      %39 = arith.sitofp %38 : vector<4x32xi32> to vector<4x32xf32>
      %40 = arith.truncf %39 : vector<4x32xf32> to vector<4x32xbf16>
      %41 = arith.index_cast %arg2 : i32 to index
      %c0_13 = arith.constant 0 : index
      %c0_14 = arith.constant 0 : index
      %42 = vector.load %arg13[%41, %c0_13, %c0_14] : memref<2x32x32xf32, #tpu.memory_space<vmem>>, vector<1x32x32xf32>
      %43 = vector.shape_cast %42 : vector<1x32x32xf32> to vector<32x32xf32>
      %44 = arith.truncf %43 : vector<32x32xf32> to vector<32x32xbf16>
      %45 = arith.index_cast %arg2 : i32 to index
      %c0_15 = arith.constant 0 : index
      %c0_16 = arith.constant 0 : index
      %46 = vector.load %arg3[%45, %c0_15, %c0_16] : memref<2x8x32xbf16, #tpu.memory_space<vmem>>, vector<1x8x32xbf16>
      %47 = vector.shape_cast %46 : vector<1x8x32xbf16> to vector<8x32xbf16>
      %c0_17 = arith.constant 0 : index
      %c0_18 = arith.constant 0 : index
      %48 = vector.load %arg6[%c0_17, %c0_18] : memref<32x32xbf16, #tpu.memory_space<vmem>>, vector<32x32xbf16>
      %cst_19 = arith.constant dense<0.000000e+00> : vector<8x32xf32>
      %49 = tpu.matmul %47, %48, %cst_19 {dimension_numbers = #tpu.dot_dimension_numbers<[1], [0], [0], [1], [0, 0, 1, 1], [], []>} : vector<8x32xbf16>, vector<32x32xbf16>, vector<8x32xf32> -> vector<8x32xf32>
      %c0_20 = arith.constant 0 : index
      %c0_21 = arith.constant 0 : index
      %50 = vector.load %arg7[%c0_20, %c0_21] : memref<1x32xf32, #tpu.memory_space<vmem>>, vector<1x32xf32>
      %51 = vector.broadcast %50 : vector<1x32xf32> to vector<8x32xf32>
      %52 = arith.addf %49, %51 : vector<8x32xf32>
      %c0_22 = arith.constant 0 : index
      %c0_23 = arith.constant 0 : index
      %53 = vector.load %arg6[%c0_22, %c0_23] : memref<32x32xbf16, #tpu.memory_space<vmem>>, vector<32x32xbf16>
      %cst_24 = arith.constant dense<0.000000e+00> : vector<32x32xf32>
      %54 = tpu.matmul %44, %53, %cst_24 {dimension_numbers = #tpu.dot_dimension_numbers<[1], [0], [0], [1], [0, 0, 1, 1], [], []>} : vector<32x32xbf16>, vector<32x32xbf16>, vector<32x32xf32> -> vector<32x32xf32>
      %c0_25 = arith.constant 0 : index
      %c0_26 = arith.constant 0 : index
      %55 = vector.load %arg7[%c0_25, %c0_26] : memref<1x32xf32, #tpu.memory_space<vmem>>, vector<1x32xf32>
      %56 = vector.broadcast %55 : vector<1x32xf32> to vector<32x32xf32>
      %57 = arith.addf %54, %56 : vector<32x32xf32>
      %c0_27 = arith.constant 0 : index
      %c0_28 = arith.constant 0 : index
      %58 = vector.load %arg8[%c0_27, %c0_28] : memref<32x32xbf16, #tpu.memory_space<vmem>>, vector<32x32xbf16>
      %cst_29 = arith.constant dense<0.000000e+00> : vector<32x32xf32>
      %59 = tpu.matmul %44, %58, %cst_29 {dimension_numbers = #tpu.dot_dimension_numbers<[1], [0], [0], [1], [0, 0, 1, 1], [], []>} : vector<32x32xbf16>, vector<32x32xbf16>, vector<32x32xf32> -> vector<32x32xf32>
      %c0_30 = arith.constant 0 : index
      %c0_31 = arith.constant 0 : index
      %60 = vector.load %arg9[%c0_30, %c0_31] : memref<1x32xf32, #tpu.memory_space<vmem>>, vector<1x32xf32>
      %61 = vector.broadcast %60 : vector<1x32xf32> to vector<32x32xf32>
      %62 = arith.addf %59, %61 : vector<32x32xf32>
      %63 = vector.shape_cast %57 : vector<32x32xf32> to vector<8x4x32xf32>
      %64 = vector.shape_cast %52 : vector<8x32xf32> to vector<8x1x32xf32>
      %65 = vector.broadcast %64 : vector<8x1x32xf32> to vector<8x4x32xf32>
      %66 = arith.mulf %63, %65 : vector<8x4x32xf32>
      %67 = vector.shape_cast %66 : vector<8x4x32xf32> to vector<32x32xf32>
      %68 = arith.truncf %67 : vector<32x32xf32> to vector<32x32xbf16>
      %cst_32 = arith.constant dense<0.000000e+00> : vector<32x4xf32>
      %69 = tpu.matmul %68, %26, %cst_32 {dimension_numbers = #tpu.dot_dimension_numbers<[1], [0], [0], [1], [0, 0, 1, 1], [], []>} : vector<32x32xbf16>, vector<32x4xbf16>, vector<32x4xf32> -> vector<32x4xf32>
      %cst_33 = arith.constant 0.176776692 : f32
      %70 = vector.broadcast %cst_33 : f32 to vector<32x4xf32>
      %71 = arith.mulf %69, %70 : vector<32x4xf32>
      %72 = vector.shape_cast %71 : vector<32x4xf32> to vector<8x4x4xf32>
      %cst_34 = arith.constant dense<0xFF800000> : vector<8x4xf32>
      %73 = vector.multi_reduction <maximumf>, %72, %cst_34 [1] : vector<8x4x4xf32> to vector<8x4xf32>
      %74 = vector.shape_cast %73 : vector<8x4xf32> to vector<8x1x4xf32>
      %75 = vector.broadcast %74 : vector<8x1x4xf32> to vector<8x4x4xf32>
      %76 = arith.subf %72, %75 : vector<8x4x4xf32>
      %77 = math.exp %76 : vector<8x4x4xf32>
      %cst_35 = arith.constant dense<0.000000e+00> : vector<8x4xf32>
      %78 = vector.multi_reduction <add>, %77, %cst_35 [1] : vector<8x4x4xf32> to vector<8x4xf32>
      %79 = vector.shape_cast %78 : vector<8x4xf32> to vector<8x1x4xf32>
      %80 = tpu.reciprocal %79 {approx = true} : vector<8x1x4xf32> -> vector<8x1x4xf32>
      %81 = vector.broadcast %80 : vector<8x1x4xf32> to vector<8x4x4xf32>
      %82 = arith.mulf %77, %81 : vector<8x4x4xf32>
      %83 = vector.shape_cast %82 : vector<8x4x4xf32> to vector<32x4xf32>
      %84 = arith.truncf %83 : vector<32x4xf32> to vector<32x4xbf16>
      %cst_36 = arith.constant dense<0.000000e+00> : vector<32x32xf32>
      %85 = tpu.matmul %84, %40, %cst_36 {dimension_numbers = #tpu.dot_dimension_numbers<[1], [0], [0], [1], [0, 0, 1, 1], [], []>} : vector<32x4xbf16>, vector<4x32xbf16>, vector<32x32xf32> -> vector<32x32xf32>
      %86 = arith.mulf %85, %62 : vector<32x32xf32>
      %87 = vector.shape_cast %86 : vector<32x32xf32> to vector<8x4x32xf32>
      %cst_37 = arith.constant dense<0.000000e+00> : vector<8x32xf32>
      %88 = vector.multi_reduction <add>, %87, %cst_37 [1] : vector<8x4x32xf32> to vector<8x32xf32>
      %89 = arith.truncf %88 : vector<8x32xf32> to vector<8x32xbf16>
      %c0_38 = arith.constant 0 : index
      %c0_39 = arith.constant 0 : index
      %90 = vector.load %arg10[%c0_38, %c0_39] : memref<32x32xbf16, #tpu.memory_space<vmem>>, vector<32x32xbf16>
      %cst_40 = arith.constant dense<0.000000e+00> : vector<8x32xf32>
      %91 = tpu.matmul %89, %90, %cst_40 {dimension_numbers = #tpu.dot_dimension_numbers<[1], [0], [0], [1], [0, 0, 1, 1], [], []>} : vector<8x32xbf16>, vector<32x32xbf16>, vector<8x32xf32> -> vector<8x32xf32>
      %c0_41 = arith.constant 0 : index
      %c0_42 = arith.constant 0 : index
      %92 = vector.load %arg11[%c0_41, %c0_42] : memref<1x32xf32, #tpu.memory_space<vmem>>, vector<1x32xf32>
      %93 = vector.broadcast %92 : vector<1x32xf32> to vector<8x32xf32>
      %94 = arith.addf %91, %93 : vector<8x32xf32>
      %95 = arith.index_cast %arg2 : i32 to index
      %c0_43 = arith.constant 0 : index
      %c0_44 = arith.constant 0 : index
      %96 = vector.load %arg12[%95, %c0_43, %c0_44] : memref<2x8x32xf32, #tpu.memory_space<vmem>>, vector<1x8x32xf32>
      %97 = vector.shape_cast %96 : vector<1x8x32xf32> to vector<8x32xf32>
      %98 = vector.shape_cast %94 : vector<8x32xf32> to vector<1x8x32xf32>
      tpu.vector_store %arg12[%95, %c0_43, %c0_44], %98 {strides = array<i32>} : memref<2x8x32xf32, #tpu.memory_space<vmem>>, vector<1x8x32xf32>,
    } else {
    }
    return
  }
  func.func @transform_0(%arg0: i32, %arg1: i32, %arg2: i32) -> (i32, i32, i32) {
    %c0_i32 = arith.constant 0 : i32
    %c0_i32_0 = arith.constant 0 : i32
    %c0_i32_1 = arith.constant 0 : i32
    return %c0_i32, %arg0, %c0_i32_0 : i32, i32, i32
  }
  func.func @transform_1(%arg0: i32, %arg1: i32, %arg2: i32) -> (i32, i32, i32) {
    %c0_i32 = arith.constant 0 : i32
    %c0_i32_0 = arith.constant 0 : i32
    return %arg2, %arg1, %c0_i32 : i32, i32, i32
  }
  func.func @transform_2(%arg0: i32, %arg1: i32, %arg2: i32) -> (i32, i32) {
    %c0_i32 = arith.constant 0 : i32
    return %arg0, %arg1 : i32, i32
  }
  func.func @transform_3(%arg0: i32, %arg1: i32, %arg2: i32) -> (i32, i32) {
    %c0_i32 = arith.constant 0 : i32
    %c0_i32_0 = arith.constant 0 : i32
    %c0_i32_1 = arith.constant 0 : i32
    return %c0_i32, %c0_i32_0 : i32, i32
  }
  func.func @transform_4(%arg0: i32, %arg1: i32, %arg2: i32) -> (i32, i32) {
    %c0_i32 = arith.constant 0 : i32
    %c0_i32_0 = arith.constant 0 : i32
    %c0_i32_1 = arith.constant 0 : i32
    return %c0_i32, %c0_i32_0 : i32, i32
  }
  func.func @transform_5(%arg0: i32, %arg1: i32, %arg2: i32) -> (i32, i32) {
    %c0_i32 = arith.constant 0 : i32
    %c0_i32_0 = arith.constant 0 : i32
    %c0_i32_1 = arith.constant 0 : i32
    return %c0_i32, %c0_i32_0 : i32, i32
  }
  func.func @transform_6(%arg0: i32, %arg1: i32, %arg2: i32) -> (i32, i32) {
    %c0_i32 = arith.constant 0 : i32
    %c0_i32_0 = arith.constant 0 : i32
    %c0_i32_1 = arith.constant 0 : i32
    return %c0_i32, %c0_i32_0 : i32, i32
  }
  func.func @transform_7(%arg0: i32, %arg1: i32, %arg2: i32) -> (i32, i32) {
    %c0_i32 = arith.constant 0 : i32
    %c0_i32_0 = arith.constant 0 : i32
    %c0_i32_1 = arith.constant 0 : i32
    return %c0_i32, %c0_i32_0 : i32, i32
  }
  func.func @transform_8(%arg0: i32, %arg1: i32, %arg2: i32) -> (i32, i32) {
    %c0_i32 = arith.constant 0 : i32
    %c0_i32_0 = arith.constant 0 : i32
    %c0_i32_1 = arith.constant 0 : i32
    return %c0_i32, %c0_i32_0 : i32, i32
  }
  func.func @transform_9(%arg0: i32, %arg1: i32, %arg2: i32) -> (i32, i32, i32) {
    %c0_i32 = arith.constant 0 : i32
    %c0_i32_0 = arith.constant 0 : i32
    %c0_i32_1 = arith.constant 0 : i32
    return %c0_i32, %arg0, %c0_i32_0 : i32, i32, i32
  }
}

</mosaic_0001>

<bundles_post_ra>
// kernel: tpu_custom_call.1
= control target key start
LH: loop header
LB: loop body
LE: loop exit
PB: predicated region body
PF: predicated region fallthrough
CT: control target
= control target key end

     0   :  { %s2468_s0 = inlined_call_operand.hbm [shape: bf16[2,8,32], index: 0, kind: input, shape index: {}]   ;;  %s2469_s1 = inlined_call_operand.hbm [shape: bf16[2,8,32], index: 1, kind: input, shape index: {}]   ;;  %s2470_s2 = inlined_call_operand.vmem [shape: bf16[32,8], index: 2, kind: input, shape index: {}]   ;;  %s2471_s3 = inlined_call_operand.vmem [shape: bf16[32,32], index: 3, kind: input, shape index: {}]   ;;  %s2472_s4 = inlined_call_operand.hbm [shape: f32[1,32], index: 4, kind: input, shape index: {}]   ;;  %s2473_s5 = inlined_call_operand.hbm [shape: bf16[32,32], index: 5, kind: input, shape index: {}]   ;;  %s2474_s6 = inlined_call_operand.hbm [shape: f32[1,32], index: 6, kind: input, shape index: {}]   ;;  %s2475_s7 = inlined_call_operand.vmem [shape: bf16[32,32], index: 7, kind: input, shape index: {}]   ;;  %s2476_s8 = inlined_call_operand.vmem [shape: f32[1,32], index: 8, kind: input, shape index: {}]   ;;  %s2477_s9 = inlined_call_operand.hbm [shape: f32[2,8,32], index: 9, kind: output, shape index: {}]  }
   0x1   :  { %2478 = sst [smem:[#allocation18_spill]] %s2468_s0 }
   0x2   :  { %2479 = sst [smem:[#allocation19_spill]] %s2472_s4 }
   0x3   :  { %2480 = sst [smem:[#allocation20_spill]] %s2473_s5 }
   0x4   :  { %14 = vsyncpa [#allocation4], 0 }
   0x5   :  { %15 = vsyncpa [#allocation7], 0 }
   0x6   :  { %17 = vsyncpa [#allocation7 + $0x1], 0 }
   0x7   :  { %18 = vsyncpa [#allocation10], 0 }
   0x8   :  { %19 = vsyncpa [#allocation5], 0  ;;  %s2143_s30 = smov 0   ;;  %s2145_s10 = smov 0  }
   0x9   :  { %s2147_s11 = smov 0   ;;  %s2149_s12 = smov 0  }
   0xa   :  { %s2151_s13 = smov 0   ;;  %s2153_s14 = smov 0  }
   0xb LB: > { %s2079_s15 = smov [#allocation8]   ;;  %s2174_s17 = sadd.s32 4294967295, %s2077_s14   ;;  %s2077_s14 = sphi %s2153_s14, %s25_s14   ;;  %s2073_s13 = sphi %s2151_s13, %s2493_s13   ;;  %s2069_s12 = sphi %s2149_s12, %s2492_s12   ;;  %s2065_s11 = sphi %s2147_s11, %s2491_s11   ;;  %s2061_s10 = sphi %s2145_s10, %s2490_s10   ;;  %s2057_s30 = sphi %s2143_s30, %s2489_s30  }
   0xc   : > { %s326_s16 = sshll.u32 %s2079_s15, 4  ;;  %p1570_p0 = scmp.ge.s32.totalorder %s2077_s14, 1  ;;  %s327_s16 = int_to_ptr.vmem [resolvable:$true] %s326_s16 }
   0xd   : > { %p93_p1 = scmp.eq.s32.totalorder %s2174_s17, 0  ;;  %p283_p2 = scmp.lt.s32.totalorder %s2077_s14, 3 }
   0xe   : > { %s2080_s19 = smov [#allocation9]   ;;  %s2081_s22 = smov [#allocation3]  }
   0xf   : > { %p2179_p3 = pnand %p1570_p0, %p283_p2  ;;  %s336_s20 = sshll.u32 %s2080_s19, 4  ;;  %s2191_s20 = int_to_ptr.vmem [resolvable:$true] %s336_s20 }
  0x10   : > { %s297_s23 = sshll.u32 %s2081_s22, 4  ;;  %s1866_s24 = scalar_lea.vmem %s327_s16, 16  ;;  %s298_s23 = int_to_ptr.vmem [resolvable:$true] %s297_s23 }
  0x11   : > { %p1726_p4 = pneg %p2179_p3  ;;  %p1867_p7 = scmp.ne.s32.totalorder %s327_s16, %s1866_s24 }
  0x12   : > { %s1873_s25 = scalar_lea.vmem %s327_s16, 32  ;;  %p1874_p10 = scmp.lt.s32.totalorder %s327_s16, %s327_s16 }
  0x13   : > { %p2187_p5 = pnand %p1726_p4, %p93_p1  ;;  %p1875_p11 = scmp.lt.s32.totalorder %s1873_s25, %s1866_s24 }
  0x15   : > { %p1857_p6 = pneg %p2187_p5  ;;  %p1876_p12 = por %p1875_p11, %p1874_p10 }
  0x17   : > { %p1869_p8 = pnand %p1867_p7, %p1857_p6 }
  0x19   : > { %p1870_p9 = pneg %p1869_p8 }
  0x1b   : > { %p1877_p13 = pnand %p1876_p12, %p1870_p9 }
  0x1d   : > { %1880 = shalt.err (!%p1877_p13)
}
  0x1e   : > { %s2483_s4 = sld [smem:[#allocation19_spill]]  ;;  %s1892_s28 = scalar_lea.vmem %s2191_s20, 256 }
  0x1f   : > { %p1893_p0 = scmp.ne.s32.totalorder %s2191_s20, %s1892_s28  ;;  %p1900_p7 = scmp.lt.s32.totalorder %s2191_s20, %s2191_s20 }
  0x20   : > { %p1901_p8 = scmp.lt.s32.totalorder %s1892_s28, %s1892_s28 }
  0x21   : > { %p1895_p2 = pnand %p1893_p0, %p1857_p6 }
  0x22   : > { %p1902_p9 = por %p1901_p8, %p1900_p7 }
  0x23   : > { %p1896_p4 = pneg %p1895_p2 }
  0x24   : > { %1732 = dma.hbm_to_vmem [thread:$0]  (!%p2187_p5), %s2483_s4, 16, %s327_s16, [#allocation7]  }
  0x25   : > { %p1903_p10 = pnand %p1902_p9, %p1896_p4 }
  0x27   : > { %1906 = shalt.err (!%p1903_p10)
}
  0x28   : > { %s2082_s29 = smov 64   ;;  %s2083_s15 = smov 4  }
  0x29   : > { %s2484_s5 = sld [smem:[#allocation20_spill]]  ;;  %s1918_s22 = scalar_lea.vmem %s298_s23, 128 }
  0x2a   : > { %p1919_p11 = scmp.ne.s32.totalorder %s298_s23, %s1918_s22  ;;  %p1926_p0 = scmp.lt.s32.totalorder %s298_s23, %s298_s23 }
  0x2b   : > { %p1927_p2 = scmp.lt.s32.totalorder %s1918_s22, %s1918_s22 }
  0x2c   : > { %p1921_p12 = pnand %p1919_p11, %p1857_p6 }
  0x2d   : > { %p1928_p4 = por %p1927_p2, %p1926_p0 }
  0x2e   : > { %p1922_p13 = pneg %p1921_p12 }
  0x2f   : > { %1735 = dma.hbm_to_vmem [thread:$0]  (!%p2187_p5), %s2484_s5, 256, %s2191_s20, [#allocation10], %s2082_s29, %s2082_s29, %s2083_s15  }
  0x30   : > { %p1929_p7 = pnand %p1928_p4, %p1922_p13 }
  0x32   : > { %1932 = shalt.err (!%p1929_p7)
}
  0x33   : > { %s2485_s0 = sld [smem:[#allocation18_spill]]  ;;  %s2084_s20 = smov [#allocation11]  }
  0x34   : > { %s350_s26 = sshll.u32 %s2084_s20, 4  ;;  %s351_s26 = int_to_ptr.vmem [resolvable:$true] %s350_s26 }
  0x35   : > { %s1944_s27 = scalar_lea.vmem %s351_s26, 16  ;;  %s1951_s28 = scalar_lea.vmem %s351_s26, 32 }
  0x36   : > { %p1945_p8 = scmp.ne.s32.totalorder %s351_s26, %s1944_s27  ;;  %p1952_p11 = scmp.lt.s32.totalorder %s351_s26, %s351_s26 }
  0x37   : > { %p1953_p12 = scmp.lt.s32.totalorder %s1951_s28, %s1944_s27 }
  0x38   : > { %p1947_p9 = pnand %p1945_p8, %p1857_p6 }
  0x39   : > { %1729 = dma.hbm_to_vmem [thread:$0]  (!%p2187_p5), %s2485_s0, 128, %s298_s23, [#allocation4], %s2082_s29, %s2082_s29, %s2083_s15  }
  0x3a   : > { %p1948_p10 = pneg %p1947_p9  ;;  %p1954_p13 = por %p1953_p12, %p1952_p11 }
  0x3c   : > { %p1955_p0 = pnand %p1954_p13, %p1948_p10 }
  0x3e   : > { %1958 = shalt.err (!%p1955_p0)
}
  0x3f   : > { %1738 = dma.hbm_to_vmem [thread:$0]  (!%p2187_p5), %s2474_s6, 16, %s351_s26, [#allocation10]  }
  0x40   : > { %s37_s23 = sadd.s32 1, %s2073_s13  ;;  %s79_s21 = sadd.s32 1, %s2065_s11 }
  0x41   : > { %p38_p6 = scmp.ge.s32.totalorder %s37_s23, 2  ;;  %p86_p2 = scmp.ne.s32.totalorder %s2065_s11, %s2061_s10 }
  0x42   : > { %p87_p4 = scmp.eq.s32.totalorder %s2077_s14, 0  ;;  %p92_p7 = scmp.ne.s32.totalorder %s2061_s10, %s2057_s30 }
  0x43   : > { %s2495_s23 = smov (%p38_p6, %s37_s23), 0  ;;  %p1747_p5 = scmp.lt.s32.totalorder %s2077_s14, 2 }
  0x44   : > { %p2241_p8 = por %p87_p4, %p86_p2  ;;  %p2247_p9 = por %p93_p1, %p92_p7 }
  0x45   : > { %s74_s22 = ssub.s32 %s2073_s13, %s2495_s23  ;;  %s367_s24 = sand.u32 1, %s2077_s14  }
  0x46   : > { %p77_p10 = scmp.eq.s32.totalorder %s74_s22, 0  ;;  %s369_s25 = sand.u32 1, %s2065_s11  }
  0x47   : > { %s1577_s30 = sshll.u32 %s369_s25, 2  ;;  %s1578_s26 = sshll.u32 %s2073_s13, 6 }
  0x48   : > { %s2257_s20 = scalar_select %p77_p10, %s2065_s11, %s79_s21  }
  0x49   : > { %s377_s19 = scalar_lea.hbm %s2469_s1, %s1578_s26  ;;  %s371_s16 = scalar_lea.vmem [#allocation6], %s1577_s30 }
  0x4a   : > { %s379_s0 = sshll.u32 %s371_s16, 4  ;;  %p2265_p11 = pnand %p1747_p5, %p2241_p8  ;;  %s380_s0 = int_to_ptr.vmem [resolvable:$true] %s379_s0 }
  0x4b   : > { %s368_s22 = scalar_lea.sflag [#allocation7], %s367_s24  ;;  %s1972_s21 = scalar_lea.vmem %s380_s0, 64 }
  0x4c   : > { %p1961_p12 = pneg %p2265_p11  ;;  %p1973_p13 = scmp.ne.s32.totalorder %s380_s0, %s1972_s21 }
  0x4d   : > { %s2085_s25 = smov [#allocation6]  }
  0x4e   : > { %p1975_p0 = pnand %p1973_p13, %p1961_p12  ;;  %s1977_s5 = sshll.u32 %s2085_s25, 4  ;;  %s1978_s5 = int_to_ptr.vmem [resolvable:$false] %s1977_s5 }
  0x4f   : > { %s1979_s26 = scalar_lea.vmem %s1978_s5, 128  ;;  %p1980_p2 = scmp.lt.s32.totalorder %s380_s0, %s1978_s5 }
  0x50   : > { %p1976_p6 = pneg %p1975_p0  ;;  %p1981_p4 = scmp.lt.s32.totalorder %s1979_s26, %s1972_s21 }
  0x52   : > { %p1982_p7 = por %p1981_p4, %p1980_p2 }
  0x54   : > { %p1983_p8 = pnand %p1982_p7, %p1976_p6 }
  0x56   : > { %1986 = shalt.err (!%p1983_p8)
}
  0x57   : > { %1742 = dma.hbm_to_vmem [thread:$0]  (!%p2265_p11), %s377_s19, 64, %s380_s0, %s368_s22  }
  0x58   : > { %388 = sbr.rel (%p2179_p3) target bundleno = 1228 (0x4cc), region = 56 }
  0x5d   : > { %2036 = dma.done.wait (%p93_p1), [#allocation4], 128  }
  0x5e   : > { %2038 = vsyncadd (%p93_p1), [#allocation4], 4294967168  ;;  %s394_s5 = sand.u32 1, %s2174_s17   ;;  %s396_s29 = sand.u32 1, %s2061_s10  }
  0x5f   : > { %s1581_s24 = sshll.u32 %s396_s29, 2  ;;  %s395_s30 = scalar_lea.sflag [#allocation7], %s394_s5 }
  0x60   : > { %s398_s27 = scalar_lea.vmem [#allocation6], %s1581_s24 }
  0x61   : > { %2040 = dma.done.wait (%p2247_p9), %s395_s30, 64  }
  0x62   : > { %2042 = vsyncadd (%p2247_p9), %s395_s30, 4294967232 }
  0x63   : > { %2044 = dma.done.wait (%p93_p1), [#allocation7], 16  }
  0x64   : > { %2046 = vsyncadd (%p93_p1), [#allocation7], 4294967280 }
  0x65   : > { %2048 = dma.done.wait (%p93_p1), [#allocation10], 272  }
  0x66   : > { %2050 = vsyncadd (%p93_p1), [#allocation10], 4294967024  ;;  %vm480_vm0 = vcmask 1043456   ;;  %vm473_vm1 = vcmask 64512   ;;  %v462_v0 = vld [vmem:[%s398_s27] sm:$0xf]  ;;  %v566_v24 = vlaneseq }
  0x67   : > { %1702 = vmatprep.subr.msk.bf16.mxu0 %vm480_vm0, %v462_v0  ;;  %v482_v1 = vsel %vm480_vm0, %v462_v0, 0  ;;  %v1815_v2 = vld [vmem:[%s2470_s2] sm:$0xff]   ;;  %v1816_v3 = vld [vmem:[%s2470_s2 + $0x8] sm:$0xff]   ;;  %v2086_v5 = vmov 0.0   ;;  %s1597_s21 = sshll.u32 %s2069_s12, 2  ;;  %v1820_v8 = vld [vmem:[#allocation9] sm:$0xff]  }
  0x68   : > { %1651 = vmatpush3.bf16.msra.mxu0 %v482_v1  ;;  %1652 = vmatprep.mubr.msk.bf16.mxu0 %vm473_vm1, %v1815_v2  ;;  %v1817_v4 = vld [vmem:[%s2471_s3 + $0x8] sm:$0xff]   ;;  %v1818_v6 = vld [vmem:[%s2471_s3] sm:$0xff]   ;;  %vm539_vm2 = vcmask 261120   ;;  %vm2087_vm3 = vmmov 0   ;;  %s616_s25 = scalar_lea.vmem [#allocation3], %s1597_s21  ;;  %s1589_s26 = sshll.u32 %s2069_s12, 5 }
  0x69   : > { %1656 = vmatprep.subr.bf16.mxu1 %v2086_v5  ;;  %1664 = vmatprep.subr.bf16.mxu0 %v1817_v4  ;;  %v1819_v7 = vld [vmem:[#allocation9 + $0x8] sm:$0xff]   ;;  %s538_s5 = scalar_lea.vmem [#allocation2], %s1589_s26  ;;  %v2320_v25 = vand.u32 127, %v566_v24  ;;  %v2322_v26 = vshrl.u32 %v566_v24, 7  ;;  %v2088_v33 = vmov 1.0|1.0  }
  0x6a   : > { %1657 = vmatpush3.bf16.msra.mxu1 %v1817_v4  ;;  %1660 = vmatprep.mubr.msk.bf16.mxu1 %vm2087_vm3, %v2086_v5  ;;  %v617_v9 = vld [vmem:[%s616_s25] sm:$0xf]  ;;  %v2089_v34 = vmov 1966171168   ;;  %v1598_v36 = vld [vmem:[#allocation8] ss:$0 sm:$0xff] }
  0x6b   : > { %1653 = vmatmul.mubr.msk.bf16.vlgmr.msra.gmra.mxu0 %vm473_vm1, %v1816_v3  ;;  %1658 = vmatprep.subr.bf16.mxu1 %v2086_v5  ;;  %v578_v27 = vadd.s32 1, %v2320_v25  ;;  %v569_v28 = vadd.s32 16, %v2322_v26  ;;  %v570_v29 = vadd.s32 24, %v2322_v26  ;;  %v573_v30 = vmul.u32 8, %v2320_v25  ;;  %s1621_s0 = sshll.u32 %s2069_s12, 3  ;;  %s2090_s4 = smov [#allocation12]  }
  0x6c   : > { %1665 = vmatpush3.bf16.msra.mxu0 %v1817_v4  ;;  %v568_v32 = vadd.s32 8, %v2322_v26  ;;  %v827_v35 = vunpack.c.l.s4 %v2089_v34  ;;  %v876_v53 = vsub.s32 0, %v2322_v26  ;;  %s1431_s18 = sshll.u32 %s2090_s4, 4  ;;  %p1752_p1 = scmp.eq.s32.totalorder %s2174_s17, 1  ;;  %s1432_s18 = int_to_ptr.vmem [resolvable:$true] %s1431_s18 }
  0x6d   : > { %1666 = vmatprep.subr.bf16.mxu0 %v1818_v6  ;;  %v579_v31 = vmul.u32 8, %v578_v27  ;;  %vm576_vm4 = vcmp.ge.s32.totalorder %v569_v28, %v573_v30  ;;  %vm577_vm5 = vcmp.ge.s32.totalorder %v570_v29, %v573_v30  ;;  %vm574_vm11 = vcmp.ge.s32.totalorder %v2322_v26, %v573_v30  ;;  %s1421_s19 = scalar_lea.vmem [#allocation12], %s1621_s0  ;;  %s1987_s16 = scalar_lea.vmem %s1432_s18, 256 }
  0x6e   : > { %1659 = vmatpush3.bf16.msra.mxu1 %v1818_v6  ;;  %vm575_vm12 = vcmp.ge.s32.totalorder %v568_v32, %v573_v30  ;;  %v828_v38 = vunpack.c.0.s8 %v827_v35  ;;  %v598_v27 = vmul.u32 8, %v2322_v26  ;;  %p1988_p3 = scmp.ne.s32.totalorder %s1432_s18, %s1987_s16  ;;  %p1994_p10 = scmp.lt.s32.totalorder %s1432_s18, %s1432_s18 }
  0x6f   : > { %1672 = vmatprep.subr.bf16.mxu1 %v1819_v7  ;;  %vm582_vm6 = vcmp.lt.s32.totalorder %v569_v28, %v579_v31  ;;  %vm583_vm7 = vcmp.lt.s32.totalorder %v570_v29, %v579_v31  ;;  %vm580_vm13 = vcmp.lt.s32.totalorder %v2322_v26, %v579_v31  ;;  %vm581_vm14 = vcmp.lt.s32.totalorder %v568_v32, %v579_v31  ;;  %p1995_p11 = scmp.lt.s32.totalorder %s1987_s16, %s1987_s16 }
  0x70   : > { %1667 = vmatpush3.bf16.msra.mxu0 %v1818_v6  ;;  %vm586_vm8 = vmand %vm576_vm4, %vm582_vm6  ;;  %v831_v40 = vsub.s32 %v828_v38, %v2322_v26  ;;  %v600_v28 = vadd.s32 1, %v2322_v26  ;;  %vm599_vm4 = vcmp.ge.s32.totalorder %v2320_v25, %v598_v27  ;;  %p1989_p9 = pnand %p1988_p3, %p1752_p1 }
  0x71   : > { %1661 = vmatmul.mubr.msk.bf16.vlgmr.msra.gmra.mxu1 %vm539_vm2, %v617_v9  ;;  %vm587_vm9 = vmand %vm577_vm5, %vm583_vm7  ;;  %vm1189_vm7 = vcmask 1041408   ;;  %p1996_p12 = por %p1995_p11, %p1994_p10 }
  0x72   : > { %1673 = vmatpush3.bf16.msra.mxu1 %v1819_v7  ;;  %vm1609_vm10 = vmpackc.low %vm587_vm9, %vm586_vm8  ;;  %v601_v29 = vmul.u32 8, %v600_v28  ;;  %vm1011_vm8 = vcmask 27648   ;;  %vm1258_vm9 = vcmask 257024   ;;  %p1990_p5 = pneg %p1989_p9 }
  0x73   : > { %1674 = vmatprep.subr.bf16.mxu1 %v1820_v8  ;;  %1680 = vmatprep.subr.msk.bf16.mxu0 %vm1609_vm10, %v2088_v33  ;;  %vm584_vm15 = vmand %vm574_vm11, %vm580_vm13  ;;  %vm1352_vm11 = vcmask 1042434   ;;  %vm1356_vm13 = vcmask 1044484  }
  0x74   : > { %vm585_vm0 = vmand %vm575_vm12, %vm581_vm14  ;;  %vm602_vm5 = vcmp.lt.s32.totalorder %v2320_v25, %v601_v29  ;;  %vm1354_vm12 = vcmask 1043459   ;;  %vm1358_vm14 = vcmask 1045509   ;;  %p1997_p13 = pnand %p1996_p12, %p1990_p5 }
  0x75   : > { %vm1611_vm1 = vmpackc.low %vm585_vm0, %vm584_vm15  ;;  %vm1360_vm15 = vcmask 1046534   ;;  %vm1362_vm0 = vcmask 1047559  }
  0x76   : > { %1675 = vmatpush3.bf16.msra.mxu1 %v1820_v8  ;;  %vm603_vm6 = vmand %vm599_vm4, %vm602_vm5 }
  0x77   : > { %v1595_v30 = vsel %vm603_vm6, 1.0, %v2086_v5 }
  0x78   : > { %v606_v31 = vpack.c.bf16 %v1595_v30, %v1595_v30 }
  0x7a   : > { %1703 = vmatprep.subr.msk.bf16.mxu1 %vm1189_vm7, %v606_v31  ;;  %v1191_v32 = vsel %vm1189_vm7, %v606_v31, 0 }
 0x12b   : > { %v1654_v10 = vpop.f32.mrf.mxu0 }
 0x12c   : > { %542 = vst.msk [vmem:[%s538_s5 + $0x10] sm:$0xff] %vm539_vm2, %v1654_v10 }
 0x12d   : > { %v518_v11 = vpop.f32.mrf.mxu0 }
 0x12e   : > { %540 = vst.msk [vmem:[%s538_s5] sm:$0xff] %vm539_vm2, %v518_v11 }
 0x12f   : > { %v1655_v12 = vpop.f32.mrf.mxu0 }
 0x130   : > { %543 = vst.msk [vmem:[%s538_s5 + $0x18] sm:$0xff] %vm539_vm2, %v1655_v12 }
 0x131   : > { %v521_v13 = vpop.f32.mrf.mxu0  ;;  %v679_v20 = vpop.f32.mrf.mxu1 }
 0x132   : > { %541 = vst.msk [vmem:[%s538_s5 + $0x8] sm:$0xff] %vm539_vm2, %v521_v13  ;;  %v680_v37 = vadd.f32 %v1598_v36, %v679_v20 }
 0x133   : > { %v611_v18 = vld [vmem:[%s538_s5 + $0x10] sm:$0xff]  ;;  %v1662_v21 = vpop.f32.mrf.mxu1 }
 0x134   : > { %v825_v39 = vcombine.high %v680_v37, %v680_v37  ;;  %v832_v42 = vrot.slane %v680_v37, %v831_v40 }
 0x135   : > { %v609_v15 = vld [vmem:[%s538_s5] sm:$0xff]  ;;  %v682_v22 = vpop.f32.mrf.mxu1 }
 0x136   : > { %v839_v41 = vrot.slane %v825_v39, %v831_v40  ;;  %v840_v44 = vcombine.high %v832_v42, %v832_v42  ;;  %v848_v46 = vrot.slane %v832_v42, %v831_v40 }
 0x137   : > { %v612_v14 = vld [vmem:[%s538_s5 + $0x18] sm:$0xff]  ;;  %v1663_v23 = vpop.f32.mrf.mxu1 }
 0x138   : > { %v614_v19 = vpack.c.bf16 %v612_v14, %v611_v18  ;;  %v841_v43 = vcombine.high %v839_v41, %v839_v41  ;;  %v862_v47 = vrot.slane %v840_v44, %v831_v40  ;;  %v855_v49 = vrot.slane %v839_v41, %v831_v40 }
 0x139   : > { %v610_v16 = vld [vmem:[%s538_s5 + $0x8] sm:$0xff]  ;;  %v870_v57 = vcombine.high %v848_v46, %v848_v46  ;;  %v877_v4 = vrot.slane %v848_v46, %v876_v53 }
 0x13a   : > { %v613_v17 = vpack.c.bf16 %v610_v16, %v609_v15  ;;  %v869_v45 = vrot.slane %v841_v43, %v831_v40  ;;  %v871_v55 = vcombine.high %v855_v49, %v855_v49  ;;  %v872_v58 = vcombine.high %v862_v47, %v862_v47 }
 0x13b   : > { %v881_v62 = vrot.slane %v862_v47, %v876_v53  ;;  %v885_v7 = vrot.slane %v870_v57, %v876_v53  ;;  %v893_v9 = vrot.slane %v855_v49, %v876_v53 }
 0x13c   : > { %1668 = vmatprep.mubr.msk.bf16.mxu0 %vm539_vm2, %v613_v17  ;;  %1676 = vmatprep.mubr.msk.bf16.mxu1 %vm539_vm2, %v613_v17  ;;  %v873_v50 = vcombine.high %v869_v45, %v869_v45  ;;  %v897_v1 = vrot.slane %v869_v45, %v876_v53  ;;  %v901_v3 = vrot.slane %v871_v55, %v876_v53 }
 0x13d   : > { %1669 = vmatmul.mubr.msk.bf16.vlgmr.msra.gmra.mxu0 %vm539_vm2, %v614_v19  ;;  %1677 = vmatmul.mubr.msk.bf16.vlgmr.msra.gmra.mxu1 %vm539_vm2, %v614_v19  ;;  %v889_v8 = vrot.slane %v872_v58, %v876_v53 }
 0x13e   : > { %1681 = vmatpush3.bf16.msk.msra.mxu0 %vm1609_vm10, %v2088_v33  ;;  %v905_v60 = vrot.slane %v873_v50, %v876_v53  ;;  %1689 = vmatpush3.bf16.msra.mxu1 %v1191_v32  ;;  %vm1350_vm10 = vcmask 1041409  }
 0x13f   : > { %1682 = vmatprep.subr.msk.bf16.mxu0 %vm1611_vm1, %v2088_v33 }
 0x142   : > { %1683 = vmatpush3.bf16.msk.msra.mxu0 %vm1611_vm1, %v2088_v33 }
 0x143   : > { %1694 = vmatprep.subr.bf16.mxu0 %v2086_v5 }
 0x1fd   : > { %v1670_v48 = vpop.f32.mrf.mxu0 }
 0x1fe   : > { %v734_v52 = vadd.f32 %v1670_v48, %v1598_v36 }
 0x1ff   : > { %v725_v51 = vpop.f32.mrf.mxu0 }
 0x200   : > { %v726_v54 = vadd.f32 %v1598_v36, %v725_v51  ;;  %v818_v0 = vcombine.high %v734_v52, %v734_v52  ;;  %v918_v18 = vmul.f32 %v893_v9, %v734_v52 }
 0x201   : > { %v1671_v56 = vpop.f32.mrf.mxu0 }
 0x202   : > { %v737_v59 = vadd.f32 %v1671_v56, %v1598_v36  ;;  %v816_v61 = vcombine.high %v726_v54, %v726_v54  ;;  %v919_v13 = vmul.f32 %v897_v1, %v818_v0  ;;  %v914_v15 = vmul.f32 %v877_v4, %v726_v54 }
 0x203   : > { %v728_v63 = vpop.f32.mrf.mxu0 }
 0x204   : > { %v819_v2 = vcombine.high %v737_v59, %v737_v59  ;;  %v729_v6 = vadd.f32 %v1598_v36, %v728_v63  ;;  %v915_v11 = vmul.f32 %v881_v62, %v816_v61  ;;  %v920_v14 = vmul.f32 %v901_v3, %v737_v59 }
 0x205   : > { %v932_v22 = vcombine.low %v918_v18, %v919_v13 }
 0x206   : > { %v921_v10 = vmul.f32 %v905_v60, %v819_v2  ;;  %v817_v12 = vcombine.high %v729_v6, %v729_v6  ;;  %v916_v16 = vmul.f32 %v885_v7, %v729_v6  ;;  %v930_v20 = vcombine.low %v914_v15, %v915_v11 }
 0x208   : > { %v917_v17 = vmul.f32 %v889_v8, %v817_v12  ;;  %v933_v19 = vcombine.low %v920_v14, %v921_v10 }
 0x20a   : > { %v931_v21 = vcombine.low %v916_v16, %v917_v17  ;;  %v939_v24 = vpack.c.bf16 %v933_v19, %v932_v22 }
 0x20c   : > { %v938_v23 = vpack.c.bf16 %v931_v21, %v930_v20 }
 0x20e   : > { %1684 = vmatprep.mubr.msk.bf16.mxu0 %vm539_vm2, %v938_v23 }
 0x20f   : > { %1685 = vmatmul.mubr.msk.bf16.vlgmr.msra.gmra.mxu0 %vm539_vm2, %v939_v24 }
 0x210   : > { %1698 = vmatprep.mubr.msk.bf16.mxu0 %vm2087_vm3, %v2086_v5  ;;  %vm1182_vm3 = vcmask 31744  }
 0x2cf   : > { %v1686_v33 = vpop.f32.mrf.mxu0 }
 0x2d0   : > { %v997_v34 = vmul.f32 0.17677669, %v1686_v33 }
 0x2d1   : > { %v980_v35 = vpop.f32.mrf.mxu0 }
 0x2d2   : > { %v2343_v36 = vcombine.high %v997_v34, %v997_v34  ;;  %v1040_v26 = vsel %vm1011_vm8, %v997_v34, -inf  ;;  %v2346_v37 = vmul.f32 0.17677669, %v980_v35 }
 0x2d3   : > { %v1041_v38 = vrot.slane %v1040_v26, 4  ;;  %v1687_v25 = vpop.f32.mrf.mxu0 }
 0x2d4   : > { %v1047_v39 = vsel %vm1011_vm8, %v2343_v36, -inf  ;;  %v2352_v40 = vcombine.high %v2346_v37, %v2346_v37  ;;  %v1012_v41 = vsel %vm1011_vm8, %v2346_v37, -inf  ;;  %v2356_v42 = vmul.f32 0.17677669, %v1687_v25 }
 0x2d5   : > { %v1042_v43 = vmax.f32 %v1040_v26, %v1041_v38  ;;  %v1048_v44 = vrot.slane %v1047_v39, 4  ;;  %v1013_v45 = vrot.slane %v1012_v41, 4  ;;  %v983_v46 = vpop.f32.mrf.mxu0 }
 0x2d6   : > { %v1019_v47 = vsel %vm1011_vm8, %v2352_v40, -inf  ;;  %v2362_v48 = vcombine.high %v2356_v42, %v2356_v42  ;;  %v1054_v49 = vsel %vm1011_vm8, %v2356_v42, -inf  ;;  %v2366_v50 = vmul.f32 0.17677669, %v983_v46 }
 0x2d7   : > { %v1043_v51 = vrot.slane %v1042_v43, 2  ;;  %v1049_v52 = vmax.f32 %v1047_v39, %v1048_v44  ;;  %v1014_v53 = vmax.f32 %v1012_v41, %v1013_v45  ;;  %v1020_v54 = vrot.slane %v1019_v47, 4 }
 0x2d8   : > { %v1055_v55 = vrot.slane %v1054_v49, 4  ;;  %v1061_v56 = vsel %vm1011_vm8, %v2362_v48, -inf  ;;  %v2372_v57 = vcombine.high %v2366_v50, %v2366_v50  ;;  %v1026_v58 = vsel %vm1011_vm8, %v2366_v50, -inf }
 0x2d9   : > { %v1044_v59 = vmax.f32 %v1042_v43, %v1043_v51  ;;  %v1050_v60 = vrot.slane %v1049_v52, 2  ;;  %v1015_v61 = vrot.slane %v1014_v53, 2  ;;  %v1021_v62 = vmax.f32 %v1019_v47, %v1020_v54 }
 0x2da   : > { %v1056_v63 = vmax.f32 %v1054_v49, %v1055_v55  ;;  %v1062_v0 = vrot.slane %v1061_v56, 4  ;;  %v1027_v1 = vrot.slane %v1026_v58, 4  ;;  %v1033_v2 = vsel %vm1011_vm8, %v2372_v57, -inf }
 0x2db   : > { %v1045_v3 = vrot.slane %v1044_v59, 1  ;;  %v1051_v4 = vmax.f32 %v1049_v52, %v1050_v60  ;;  %v1016_v6 = vmax.f32 %v1014_v53, %v1015_v61  ;;  %v1022_v7 = vrot.slane %v1021_v62, 2 }
 0x2dc   : > { %v1057_v8 = vrot.slane %v1056_v63, 2  ;;  %v1063_v9 = vmax.f32 %v1061_v56, %v1062_v0  ;;  %v1028_v10 = vmax.f32 %v1026_v58, %v1027_v1  ;;  %v1034_v11 = vrot.slane %v1033_v2, 4 }
 0x2dd   : > { %v1046_v12 = vmax.f32 %v1044_v59, %v1045_v3  ;;  %v1052_v13 = vrot.slane %v1051_v4, 1  ;;  %v1017_v14 = vrot.slane %v1016_v6, 1  ;;  %v1023_v15 = vmax.f32 %v1021_v62, %v1022_v7 }
 0x2de   : > { %v1058_v16 = vmax.f32 %v1056_v63, %v1057_v8  ;;  %v1064_v17 = vrot.slane %v1063_v9, 2  ;;  %v1029_v18 = vrot.slane %v1028_v10, 2  ;;  %v1035_v19 = vmax.f32 %v1033_v2, %v1034_v11 }
 0x2df   : > { %v1053_v20 = vmax.f32 %v1051_v4, %v1052_v13  ;;  %v1072_v21 = vsub.f32 %v997_v34, %v1046_v12  ;;  %v1018_v22 = vmax.f32 %v1016_v6, %v1017_v14  ;;  %v1024_v23 = vrot.slane %v1023_v15, 1 }
 0x2e0   : > { %v1059_v24 = vrot.slane %v1058_v16, 1  ;;  %v1065_v27 = vmax.f32 %v1063_v9, %v1064_v17  ;;  %v1030_v28 = vmax.f32 %v1028_v10, %v1029_v18  ;;  %v1036_v29 = vrot.slane %v1035_v19, 2 }
 0x2e1   : > { %v1073_v30 = vsub.f32 %v2343_v36, %v1053_v20  ;;  %v1084_v31 = vmul.f32 1.442695, %v1072_v21  ;;  %v1025_v32 = vmax.f32 %v1023_v15, %v1024_v23  ;;  %v1068_v33 = vsub.f32 %v2346_v37, %v1018_v22 }
 0x2e2   : > { %v1060_v35 = vmax.f32 %v1058_v16, %v1059_v24  ;;  %v1066_v26 = vrot.slane %v1065_v27, 1  ;;  %v1031_v38 = vrot.slane %v1030_v28, 1  ;;  %v1037_v25 = vmax.f32 %v1035_v19, %v1036_v29 }
 0x2e3   : > { %1823 = vpow2.f32 %v1084_v31  ;;  %v1086_v39 = vmul.f32 1.442695, %v1073_v30  ;;  %v1069_v34 = vsub.f32 %v2352_v40, %v1025_v32  ;;  %v1076_v41 = vmul.f32 1.442695, %v1068_v33 }
 0x2e4   : > { %v1067_v43 = vmax.f32 %v1065_v27, %v1066_v26  ;;  %v1074_v44 = vsub.f32 %v2356_v42, %v1060_v35  ;;  %v1032_v45 = vmax.f32 %v1030_v28, %v1031_v38  ;;  %v1038_v46 = vrot.slane %v1037_v25, 1 }
 0x2e5   : > { %1825 = vpow2.f32 %v1086_v39  ;;  %v1078_v36 = vmul.f32 1.442695, %v1069_v34 }
 0x2e6   : > { %1827 = vpow2.f32 %v1076_v41  ;;  %v1075_v47 = vsub.f32 %v2362_v48, %v1067_v43  ;;  %v1088_v37 = vmul.f32 1.442695, %v1074_v44  ;;  %v1039_v49 = vmax.f32 %v1037_v25, %v1038_v46 }
 0x2e7   : > { %1829 = vpow2.f32 %v1078_v36  ;;  %v1070_v51 = vsub.f32 %v2366_v50, %v1032_v45 }
 0x2e8   : > { %1831 = vpow2.f32 %v1088_v37  ;;  %v1090_v52 = vmul.f32 1.442695, %v1075_v47  ;;  %v1071_v40 = vsub.f32 %v2372_v57, %v1039_v49 }
 0x2e9   : > { %v1080_v53 = vmul.f32 1.442695, %v1070_v51 }
 0x2ea   : > { %1833 = vpow2.f32 %v1090_v52  ;;  %v1082_v54 = vmul.f32 1.442695, %v1071_v40 }
 0x2eb   : > { %1835 = vpow2.f32 %v1080_v53 }
 0x2ec   : > { %1837 = vpow2.f32 %v1082_v54 }
 0x2f0   : > { %v2385_v42 = vpop.eup %1823 }
 0x2f1   : > { %v1120_v55 = vsel %vm1011_vm8, %v2385_v42, 0.0 }
 0x2f2   : > { %v2389_v48 = vpop.eup %1825  ;;  %v1121_v56 = vrot.slane %v1120_v55, 4 }
 0x2f3   : > { %v2391_v58 = vpop.eup %1827  ;;  %v1127_v50 = vsel %vm1011_vm8, %v2389_v48, 0.0 }
 0x2f4   : > { %v2395_v59 = vpop.eup %1829  ;;  %v1122_v57 = vadd.f32 %v1121_v56, %v1120_v55  ;;  %v1128_v60 = vrot.slane %v1127_v50, 4  ;;  %v1092_v61 = vsel %vm1011_vm8, %v2391_v58, 0.0 }
 0x2f5   : > { %v2399_v62 = vpop.eup %1831  ;;  %v1093_v63 = vrot.slane %v1092_v61, 4  ;;  %v1099_v0 = vsel %vm1011_vm8, %v2395_v59, 0.0 }
 0x2f6   : > { %v1129_v1 = vadd.f32 %v1128_v60, %v1127_v50  ;;  %v1100_v2 = vrot.slane %v1099_v0, 4  ;;  %v1134_v3 = vsel %vm1011_vm8, %v2399_v62, 0.0  ;;  %v1123_v9 = vrot.slane %v1122_v57, 2 }
 0x2f7   : > { %v1834_v4 = vpop.eup %1833  ;;  %v1094_v6 = vadd.f32 %v1093_v63, %v1092_v61  ;;  %v1135_v7 = vrot.slane %v1134_v3, 4 }
 0x2f8   : > { %v2405_v8 = vpop.eup %1835  ;;  %v1130_v10 = vrot.slane %v1129_v1, 2  ;;  %v1101_v11 = vadd.f32 %v1100_v2, %v1099_v0  ;;  %v1141_v12 = vsel %vm1011_vm8, %v1834_v4, 0.0  ;;  %v1124_v27 = vadd.f32 %v1123_v9, %v1122_v57 }
 0x2f9   : > { %v1838_v13 = vpop.eup %1837  ;;  %v1095_v14 = vrot.slane %v1094_v6, 2  ;;  %v1136_v15 = vadd.f32 %v1135_v7, %v1134_v3  ;;  %v1142_v16 = vrot.slane %v1141_v12, 4  ;;  %v1106_v17 = vsel %vm1011_vm8, %v2405_v8, 0.0 }
 0x2fa   : > { %v1131_v18 = vadd.f32 %v1130_v10, %v1129_v1  ;;  %v1102_v19 = vrot.slane %v1101_v11, 2  ;;  %v1107_v20 = vrot.slane %v1106_v17, 4  ;;  %v1113_v24 = vsel %vm1011_vm8, %v1838_v13, 0.0 }
 0x2fb   : > { %v1096_v21 = vadd.f32 %v1095_v14, %v1094_v6  ;;  %v1137_v22 = vrot.slane %v1136_v15, 2  ;;  %v1143_v23 = vadd.f32 %v1142_v16, %v1141_v12  ;;  %v1114_v35 = vrot.slane %v1113_v24, 4 }
 0x2fc   : > { %v1132_v28 = vrot.slane %v1131_v18, 1  ;;  %v1103_v29 = vadd.f32 %v1102_v19, %v1101_v11  ;;  %v1108_v30 = vadd.f32 %v1107_v20, %v1106_v17  ;;  %v1125_v44 = vrot.slane %v1124_v27, 1 }
 0x2fd   : > { %v1097_v31 = vrot.slane %v1096_v21, 1  ;;  %v1138_v32 = vadd.f32 %v1137_v22, %v1136_v15  ;;  %v1144_v33 = vrot.slane %v1143_v23, 2  ;;  %v1115_v43 = vadd.f32 %v1114_v35, %v1113_v24 }
 0x2fe   : > { %v1133_v26 = vadd.f32 %v1132_v28, %v1131_v18  ;;  %v1104_v38 = vrot.slane %v1103_v29, 1  ;;  %v1109_v25 = vrot.slane %v1108_v30, 2  ;;  %v1126_v40 = vadd.f32 %v1125_v44, %v1124_v27 }
 0x2ff   : > { %v1098_v39 = vadd.f32 %v1097_v31, %v1096_v21  ;;  %v1139_v34 = vrot.slane %v1138_v32, 1  ;;  %v1145_v41 = vadd.f32 %v1144_v33, %v1143_v23  ;;  %v1116_v47 = vrot.slane %v1115_v43, 2 }
 0x300   : > { %v1110_v45 = vadd.f32 %v1109_v25, %v1108_v30  ;;  %v1105_v46 = vadd.f32 %v1104_v38, %v1103_v29  ;;  %1839 = vrcp.f32 %v1133_v26 }
 0x301   : > { %v1146_v36 = vrot.slane %v1145_v41, 1  ;;  %v1140_v37 = vadd.f32 %v1139_v34, %v1138_v32  ;;  %v1117_v52 = vadd.f32 %v1116_v47, %v1115_v43  ;;  %1841 = vrcp.f32 %v1098_v39 }
 0x302   : > { %v1111_v49 = vrot.slane %v1110_v45, 1  ;;  %1843 = vrcp.f32 %v1105_v46 }
 0x303   : > { %v1147_v51 = vadd.f32 %v1146_v36, %v1145_v41  ;;  %v1118_v54 = vrot.slane %v1117_v52, 1 }
 0x304   : > { %v1112_v53 = vadd.f32 %v1111_v49, %v1110_v45 }
 0x305   : > { %1845 = vrcp.f32 %v1147_v51  ;;  %v1119_v55 = vadd.f32 %v1118_v54, %v1117_v52 }
 0x306   : > { %1847 = vrcp.f32 %v1140_v37 }
 0x307   : > { %1849 = vrcp.f32 %v1112_v53 }
 0x308   : > { %1851 = vrcp.f32 %v1126_v40 }
 0x309   : > { %1853 = vrcp.f32 %v1119_v55 }
 0x30d   : > { %v1840_v56 = vpop.eup %1839 }
 0x30e   : > { %v1842_v50 = vpop.eup %1841  ;;  %v1161_v6 = vmul.f32 %v1840_v56, %v2389_v48  ;;  %v1821_v48 = vld [vmem:[%s2475_s7 + $0x8] sm:$0xff]  }
 0x30f   : > { %v1844_v57 = vpop.eup %1843  ;;  %v1156_v9 = vmul.f32 %v1842_v50, %v2391_v58  ;;  %1695 = vmatpush3.bf16.msra.mxu0 %v1821_v48  ;;  %v1678_v58 = vpop.f32.mrf.mxu1 }
 0x310   : > { %v1157_v2 = vmul.f32 %v1844_v57, %v2395_v59  ;;  %1696 = vmatprep.subr.bf16.mxu0 %v2086_v5 }
 0x311   : > { %v797_v59 = vpop.f32.mrf.mxu1 }
 0x312   : > { %v1846_v60 = vpop.eup %1845  ;;  %v1172_v15 = vcombine.low %v1156_v9, %v1157_v2 }
 0x313   : > { %v1848_v61 = vpop.eup %1847  ;;  %v1163_v0 = vmul.f32 %v1846_v60, %v1834_v4 }
 0x314   : > { %v1850_v63 = vpop.eup %1849  ;;  %v1162_v7 = vmul.f32 %v1848_v61, %v2399_v62  ;;  %v1679_v62 = vpop.f32.mrf.mxu1 }
 0x315   : > { %v1852_v1 = vpop.eup %1851  ;;  %v1158_v10 = vmul.f32 %v1850_v63, %v2405_v8  ;;  %v1604_v8 = vld [vmem:[#allocation11] ss:$0 sm:$0xff] }
 0x316   : > { %v1854_v3 = vpop.eup %1853  ;;  %v1160_v12 = vmul.f32 %v1852_v1, %v2385_v42  ;;  %v1175_v14 = vcombine.low %v1162_v7, %v1163_v0  ;;  %v1822_v42 = vld [vmem:[%s2475_s7] sm:$0xff]   ;;  %v806_v19 = vadd.f32 %v1678_v58, %v1604_v8  ;;  %v798_v21 = vadd.f32 %v1604_v8, %v797_v59 }
 0x317   : > { %v1159_v11 = vmul.f32 %v1854_v3, %v1838_v13  ;;  %1697 = vmatpush3.bf16.msra.mxu0 %v1822_v42  ;;  %v800_v13 = vpop.f32.mrf.mxu1  ;;  %v809_v24 = vadd.f32 %v1679_v62, %v1604_v8 }
 0x318   : > { %v1174_v4 = vcombine.low %v1160_v12, %v1161_v6  ;;  %v801_v29 = vadd.f32 %v1604_v8, %v800_v13 }
 0x319   : > { %v1173_v16 = vcombine.low %v1158_v10, %v1159_v11 }
 0x31a   : > { %v1181_v18 = vpack.c.bf16 %v1175_v14, %v1174_v4 }
 0x31b   : > { %v1180_v17 = vpack.c.bf16 %v1173_v16, %v1172_v15 }
 0x31d   : > { %1690 = vmatprep.mubr.msk.bf16.mxu1 %vm1182_vm3, %v1180_v17 }
 0x31e   : > { %1691 = vmatmul.mubr.msk.bf16.vlgmr.msra.gmra.mxu1 %vm1182_vm3, %v1181_v18 }
 0x3de   : > { %v1692_v20 = vpop.f32.mrf.mxu1 }
 0x3df   : > { %v1244_v22 = vmul.f32 %v1692_v20, %v806_v19 }
 0x3e0   : > { %v1227_v23 = vpop.f32.mrf.mxu1 }
 0x3e1   : > { %v1252_v27 = vcombine.high %v1244_v22, %v1244_v22  ;;  %v1287_v5 = vsel %vm1258_vm9, %v1244_v22, 0.0  ;;  %v1242_v28 = vmul.f32 %v1227_v23, %v798_v21 }
 0x3e2   : > { %v1288_v30 = vrot.slane %v1287_v5, 4  ;;  %v1693_v31 = vpop.f32.mrf.mxu1 }
 0x3e3   : > { %v1294_v32 = vsel %vm1258_vm9, %v1252_v27, 0.0  ;;  %v1250_v33 = vcombine.high %v1242_v28, %v1242_v28  ;;  %v1259_v35 = vsel %vm1258_vm9, %v1242_v28, 0.0  ;;  %v1245_v26 = vmul.f32 %v1693_v31, %v809_v24 }
 0x3e4   : > { %v1289_v38 = vadd.f32 %v1288_v30, %v1287_v5  ;;  %v1295_v25 = vrot.slane %v1294_v32, 4  ;;  %v1260_v39 = vrot.slane %v1259_v35, 4  ;;  %v1230_v34 = vpop.f32.mrf.mxu1 }
 0x3e5   : > { %v1266_v41 = vsel %vm1258_vm9, %v1250_v33, 0.0  ;;  %v1253_v43 = vcombine.high %v1245_v26, %v1245_v26  ;;  %v1301_v44 = vsel %vm1258_vm9, %v1245_v26, 0.0  ;;  %v1243_v45 = vmul.f32 %v1230_v34, %v801_v29 }
 0x3e6   : > { %v1290_v46 = vrot.slane %v1289_v38, 2  ;;  %v1296_v36 = vadd.f32 %v1295_v25, %v1294_v32  ;;  %v1261_v47 = vadd.f32 %v1260_v39, %v1259_v35  ;;  %v1267_v37 = vrot.slane %v1266_v41, 4 }
 0x3e7   : > { %v1302_v49 = vrot.slane %v1301_v44, 4  ;;  %v1308_v51 = vsel %vm1258_vm9, %v1253_v43, 0.0  ;;  %v1251_v52 = vcombine.high %v1243_v45, %v1243_v45  ;;  %v1273_v40 = vsel %vm1258_vm9, %v1243_v45, 0.0 }
 0x3e8   : > { %v1297_v53 = vrot.slane %v1296_v36, 2  ;;  %v1262_v54 = vrot.slane %v1261_v47, 2  ;;  %v1268_v55 = vadd.f32 %v1267_v37, %v1266_v41  ;;  %v1309_v50 = vrot.slane %v1308_v51, 4 }
 0x3e9   : > { %v1303_v56 = vadd.f32 %v1302_v49, %v1301_v44  ;;  %v1274_v57 = vrot.slane %v1273_v40, 4  ;;  %v1280_v60 = vsel %vm1258_vm9, %v1251_v52, 0.0  ;;  %v1291_v61 = vadd.f32 %v1290_v46, %v1289_v38 }
 0x3ea   : > { %v1298_v63 = vadd.f32 %v1297_v53, %v1296_v36  ;;  %v1263_v0 = vadd.f32 %v1262_v54, %v1261_v47  ;;  %v1269_v1 = vrot.slane %v1268_v55, 2  ;;  %v1310_v3 = vadd.f32 %v1309_v50, %v1308_v51  ;;  %v1617_v53 = vld [vmem:[%s2476_s8] ss:$0 sm:$0xff] }
 0x3eb   : > { %v1304_v2 = vrot.slane %v1303_v56, 2  ;;  %v1275_v6 = vadd.f32 %v1274_v57, %v1273_v40  ;;  %v1281_v7 = vrot.slane %v1280_v60, 4  ;;  %v1292_v16 = vrot.slane %v1291_v61, 1 }
 0x3ec   : > { %v1264_v9 = vrot.slane %v1263_v0, 1  ;;  %v1270_v10 = vadd.f32 %v1269_v1, %v1268_v55  ;;  %v1311_v12 = vrot.slane %v1310_v3, 2  ;;  %v1299_v18 = vrot.slane %v1298_v63, 1 }
 0x3ed   : > { %v1305_v11 = vadd.f32 %v1304_v2, %v1303_v56  ;;  %v1276_v14 = vrot.slane %v1275_v6, 2  ;;  %v1282_v15 = vadd.f32 %v1281_v7, %v1280_v60  ;;  %v1293_v21 = vadd.f32 %v1292_v16, %v1291_v61 }
 0x3ee   : > { %v1265_v4 = vadd.f32 %v1264_v9, %v1263_v0  ;;  %v1271_v17 = vrot.slane %v1270_v10, 1  ;;  %v1312_v48 = vadd.f32 %v1311_v12, %v1310_v3  ;;  %v1300_v23 = vadd.f32 %v1299_v18, %v1298_v63 }
 0x3ef   : > { %v1277_v42 = vadd.f32 %v1276_v14, %v1275_v6  ;;  %v1283_v58 = vrot.slane %v1282_v15, 2  ;;  %v1306_v8 = vrot.slane %v1305_v11, 1  ;;  %v1319_v33 = vpack.c.bf16 %v1293_v21, %v1293_v21 }
 0x3f0   : > { %v1272_v59 = vadd.f32 %v1271_v17, %v1270_v10  ;;  %v1315_v62 = vpack.c.bf16 %v1265_v4, %v1265_v4  ;;  %v1313_v13 = vrot.slane %v1312_v48, 1  ;;  %v1320_v26 = vpack.c.bf16 %v1300_v23, %v1300_v23 }
 0x3f1   : > { %v1278_v19 = vrot.slane %v1277_v42, 1  ;;  %v1284_v20 = vadd.f32 %v1283_v58, %v1282_v15  ;;  %v1307_v29 = vadd.f32 %v1306_v8, %v1305_v11  ;;  %v1346_v44 = vunpack.c.l.b16 %v1319_v33 }
 0x3f2   : > { %v1316_v22 = vpack.c.bf16 %v1272_v59, %v1272_v59  ;;  %v1342_v5 = vunpack.c.l.b16 %v1315_v62  ;;  %v1314_v30 = vadd.f32 %v1313_v13, %v1312_v48  ;;  %v1347_v45 = vunpack.c.l.b16 %v1320_v26 }
 0x3f3   : > { %v1279_v24 = vadd.f32 %v1278_v19, %v1277_v42  ;;  %v1285_v27 = vrot.slane %v1284_v20, 1  ;;  %v1321_v39 = vpack.c.bf16 %v1307_v29, %v1307_v29 }
 0x3f4   : > { %v1343_v28 = vunpack.c.l.b16 %v1316_v22  ;;  %v1322_v34 = vpack.c.bf16 %v1314_v30, %v1314_v30 }
 0x3f5   : > { %v1286_v31 = vadd.f32 %v1285_v27, %v1284_v20  ;;  %v1317_v32 = vpack.c.bf16 %v1279_v24, %v1279_v24  ;;  %v1348_v36 = vunpack.c.l.b16 %v1321_v39 }
 0x3f6   : > { %v1351_v35 = vsel %vm1350_vm10, %v1343_v28, %v1342_v5  ;;  %v1349_v37 = vunpack.c.l.b16 %v1322_v34 }
 0x3f7   : > { %v1318_v38 = vpack.c.bf16 %v1286_v31, %v1286_v31  ;;  %v1344_v25 = vunpack.c.l.b16 %v1317_v32 }
 0x3f9   : > { %v1345_v41 = vunpack.c.l.b16 %v1318_v38  ;;  %v1353_v43 = vsel %vm1352_vm11, %v1344_v25, %v1351_v35 }
 0x3fb   : > { %v1355_v46 = vsel %vm1354_vm12, %v1345_v41, %v1353_v43 }
 0x3fc   : > { %v1357_v47 = vsel %vm1356_vm13, %v1346_v44, %v1355_v46 }
 0x3fd   : > { %v1359_v49 = vsel %vm1358_vm14, %v1347_v45, %v1357_v47 }
 0x3fe   : > { %v1361_v51 = vsel %vm1360_vm15, %v1348_v36, %v1359_v49 }
 0x3ff   : > { %v1363_v52 = vsel %vm1362_vm0, %v1349_v37, %v1361_v51 }
 0x400   : > { %v1364_v40 = vpack.c.b16 %v1363_v52, %v1363_v52 }
 0x402   : > { %1699 = vmatmul.mubr.msk.bf16.vlgmr.msra.gmra.mxu0 %vm539_vm2, %v1364_v40 }
 0x4c2   : > { %v1414_v54 = vpop.f32.mrf.mxu0 }
 0x4c3   : > { %v1415_v55 = vadd.f32 %v1617_v53, %v1414_v54 }
 0x4c4   : > { %v1700_v56 = vpop.f32.mrf.mxu0 }
 0x4c5   : > { %1422 = vst.msk [vmem:[%s1421_s19] sm:$0xff] %vm539_vm2, %v1415_v55 }
 0x4c6   : > { %v1417_v50 = vpop.f32.mrf.mxu0 }
 0x4c7   : > { %2000 = shalt.err (!%p1997_p13)
}
 0x4c8   : > { %s2091_s12 = smov 128   ;;  %s2092_s22 = smov 8   ;;  %v1701_v57 = vpop.f32.mrf.mxu0 }
 0x4c9   : > { %1723 = dma.vmem_to_hbm [thread:$0]  (%p1752_p1), %s1432_s18, 256, %s2477_s9, [#allocation5], %s2091_s12, %s2091_s12, %s2092_s22  }
 0x4ca   : > { %2052 = dma.done.wait (%p1752_p1), [#allocation5], 256  }
 0x4cb   : > { %2054 = vsyncadd (%p1752_p1), [#allocation5], 4294967040 }
 0x4cc PF: > { %s25_s14 = sadd.s32 1, %s2077_s14   ;;  %s2489_s30 = smov %s2061_s10 }
 0x4cd   : > { %p22_p0 = scmp.ge.s32.totalorder %s25_s14, 4   ;;  %s2490_s10 = smov %s2065_s11 }
 0x4ce   : > { %s2491_s11 = smov %s2257_s20  ;;  %s2492_s12 = smov %s2073_s13 }
 0x4cf   : > { %s2493_s13 = smov %s2495_s23  ;;  %24 = sbr.rel (!%p22_p0) target bundleno = 11 (0xb), region = 132 }
 0x4d4   :  { %1447 = vsyncpa [#allocation4], 1 }
 0x4d5   :  { %1449 = vsyncpa [#allocation4 + $0x1], 1 }
 0x4d6   :  { %1450 = vsyncpa [#allocation7], 1 }
 0x4d7   :  { %1452 = vsyncpa [#allocation7 + $0x1], 1 }
 0x4d8   :  { %1453 = vsyncpa [#allocation10], 1 }
 0x4d9   :  { %1454 = vsyncpa [#allocation5], 1 }
 0x4da   :  { %1456 = vsyncpa [#allocation5 + $0x1], 1 }

// kernel: tpu_custom_call.1
= control target key start
LH: loop header
LB: loop body
LE: loop exit
PB: predicated region body
PF: predicated region fallthrough
CT: control target
= control target key end

     0   :  { %s2468_s0 = inlined_call_operand.hbm [shape: bf16[2,8,32], index: 0, kind: input, shape index: {}]   ;;  %s2469_s1 = inlined_call_operand.hbm [shape: bf16[2,8,32], index: 1, kind: input, shape index: {}]   ;;  %s2470_s2 = inlined_call_operand.vmem [shape: bf16[32,8], index: 2, kind: input, shape index: {}]   ;;  %s2471_s3 = inlined_call_operand.vmem [shape: bf16[32,32], index: 3, kind: input, shape index: {}]   ;;  %s2472_s4 = inlined_call_operand.hbm [shape: f32[1,32], index: 4, kind: input, shape index: {}]   ;;  %s2473_s5 = inlined_call_operand.hbm [shape: bf16[32,32], index: 5, kind: input, shape index: {}]   ;;  %s2474_s6 = inlined_call_operand.hbm [shape: f32[1,32], index: 6, kind: input, shape index: {}]   ;;  %s2475_s7 = inlined_call_operand.vmem [shape: bf16[32,32], index: 7, kind: input, shape index: {}]   ;;  %s2476_s8 = inlined_call_operand.vmem [shape: f32[1,32], index: 8, kind: input, shape index: {}]   ;;  %s2477_s9 = inlined_call_operand.hbm [shape: f32[2,8,32], index: 9, kind: output, shape index: {}]  }
   0x1   :  { %2478 = sst [smem:[#allocation18_spill]] %s2468_s0 }
   0x2   :  { %2479 = sst [smem:[#allocation19_spill]] %s2472_s4 }
   0x3   :  { %2480 = sst [smem:[#allocation20_spill]] %s2473_s5 }
   0x4   :  { %14 = vsyncpa [#allocation4], 0 }
   0x5   :  { %15 = vsyncpa [#allocation7], 0 }
   0x6   :  { %17 = vsyncpa [#allocation7 + $0x1], 0 }
   0x7   :  { %18 = vsyncpa [#allocation10], 0 }
   0x8   :  { %19 = vsyncpa [#allocation5], 0  ;;  %s2143_s30 = smov 0   ;;  %s2145_s10 = smov 0  }
   0x9   :  { %s2147_s11 = smov 0   ;;  %s2149_s12 = smov 0  }
   0xa   :  { %s2151_s13 = smov 0   ;;  %s2153_s14 = smov 0  }
   0xb LB: > { %s2079_s15 = smov [#allocation8]   ;;  %s2174_s17 = sadd.s32 4294967295, %s2077_s14   ;;  %s2077_s14 = sphi %s2153_s14, %s25_s14   ;;  %s2073_s13 = sphi %s2151_s13, %s2493_s13   ;;  %s2069_s12 = sphi %s2149_s12, %s2492_s12   ;;  %s2065_s11 = sphi %s2147_s11, %s2491_s11   ;;  %s2061_s10 = sphi %s2145_s10, %s2490_s10   ;;  %s2057_s30 = sphi %s2143_s30, %s2489_s30  }
   0xc   : > { %s326_s16 = sshll.u32 %s2079_s15, 4  ;;  %p1570_p0 = scmp.ge.s32.totalorder %s2077_s14, 1  ;;  %s327_s16 = int_to_ptr.vmem [resolvable:$true] %s326_s16 }
   0xd   : > { %p93_p1 = scmp.eq.s32.totalorder %s2174_s17, 0  ;;  %p283_p2 = scmp.lt.s32.totalorder %s2077_s14, 3 }
   0xe   : > { %s2080_s19 = smov [#allocation9]   ;;  %s2081_s22 = smov [#allocation3]  }
   0xf   : > { %p2179_p3 = pnand %p1570_p0, %p283_p2  ;;  %s336_s20 = sshll.u32 %s2080_s19, 4  ;;  %s2191_s20 = int_to_ptr.vmem [resolvable:$true] %s336_s20 }
  0x10   : > { %s297_s23 = sshll.u32 %s2081_s22, 4  ;;  %s1866_s24 = scalar_lea.vmem %s327_s16, 16  ;;  %s298_s23 = int_to_ptr.vmem [resolvable:$true] %s297_s23 }
  0x11   : > { %p1726_p4 = pneg %p2179_p3  ;;  %p1867_p7 = scmp.ne.s32.totalorder %s327_s16, %s1866_s24 }
  0x12   : > { %s1873_s25 = scalar_lea.vmem %s327_s16, 32  ;;  %p1874_p10 = scmp.lt.s32.totalorder %s327_s16, %s327_s16 }
  0x13   : > { %p2187_p5 = pnand %p1726_p4, %p93_p1  ;;  %p1875_p11 = scmp.lt.s32.totalorder %s1873_s25, %s1866_s24 }
  0x15   : > { %p1857_p6 = pneg %p2187_p5  ;;  %p1876_p12 = por %p1875_p11, %p1874_p10 }
  0x17   : > { %p1869_p8 = pnand %p1867_p7, %p1857_p6 }
  0x19   : > { %p1870_p9 = pneg %p1869_p8 }
  0x1b   : > { %p1877_p13 = pnand %p1876_p12, %p1870_p9 }
  0x1d   : > { %1880 = shalt.err (!%p1877_p13)
}
  0x1e   : > { %s2483_s4 = sld [smem:[#allocation19_spill]]  ;;  %s1892_s28 = scalar_lea.vmem %s2191_s20, 256 }
  0x1f   : > { %p1893_p0 = scmp.ne.s32.totalorder %s2191_s20, %s1892_s28  ;;  %p1900_p7 = scmp.lt.s32.totalorder %s2191_s20, %s2191_s20 }
  0x20   : > { %p1901_p8 = scmp.lt.s32.totalorder %s1892_s28, %s1892_s28 }
  0x21   : > { %p1895_p2 = pnand %p1893_p0, %p1857_p6 }
  0x22   : > { %p1902_p9 = por %p1901_p8, %p1900_p7 }
  0x23   : > { %p1896_p4 = pneg %p1895_p2 }
  0x24   : > { %1732 = dma.hbm_to_vmem [thread:$0]  (!%p2187_p5), %s2483_s4, 16, %s327_s16, [#allocation7]  }
  0x25   : > { %p1903_p10 = pnand %p1902_p9, %p1896_p4 }
  0x27   : > { %1906 = shalt.err (!%p1903_p10)
}
  0x28   : > { %s2082_s29 = smov 64   ;;  %s2083_s15 = smov 4  }
  0x29   : > { %s2484_s5 = sld [smem:[#allocation20_spill]]  ;;  %s1918_s22 = scalar_lea.vmem %s298_s23, 128 }
  0x2a   : > { %p1919_p11 = scmp.ne.s32.totalorder %s298_s23, %s1918_s22  ;;  %p1926_p0 = scmp.lt.s32.totalorder %s298_s23, %s298_s23 }
  0x2b   : > { %p1927_p2 = scmp.lt.s32.totalorder %s1918_s22, %s1918_s22 }
  0x2c   : > { %p1921_p12 = pnand %p1919_p11, %p1857_p6 }
  0x2d   : > { %p1928_p4 = por %p1927_p2, %p1926_p0 }
  0x2e   : > { %p1922_p13 = pneg %p1921_p12 }
  0x2f   : > { %1735 = dma.hbm_to_vmem [thread:$0]  (!%p2187_p5), %s2484_s5, 256, %s2191_s20, [#allocation10], %s2082_s29, %s2082_s29, %s2083_s15  }
  0x30   : > { %p1929_p7 = pnand %p1928_p4, %p1922_p13 }
  0x32   : > { %1932 = shalt.err (!%p1929_p7)
}
  0x33   : > { %s2485_s0 = sld [smem:[#allocation18_spill]]  ;;  %s2084_s20 = smov [#allocation11]  }
  0x34   : > { %s350_s26 = sshll.u32 %s2084_s20, 4  ;;  %s351_s26 = int_to_ptr.vmem [resolvable:$true] %s350_s26 }
  0x35   : > { %s1944_s27 = scalar_lea.vmem %s351_s26, 16  ;;  %s1951_s28 = scalar_lea.vmem %s351_s26, 32 }
  0x36   : > { %p1945_p8 = scmp.ne.s32.totalorder %s351_s26, %s1944_s27  ;;  %p1952_p11 = scmp.lt.s32.totalorder %s351_s26, %s351_s26 }
  0x37   : > { %p1953_p12 = scmp.lt.s32.totalorder %s1951_s28, %s1944_s27 }
  0x38   : > { %p1947_p9 = pnand %p1945_p8, %p1857_p6 }
  0x39   : > { %1729 = dma.hbm_to_vmem [thread:$0]  (!%p2187_p5), %s2485_s0, 128, %s298_s23, [#allocation4], %s2082_s29, %s2082_s29, %s2083_s15  }
  0x3a   : > { %p1948_p10 = pneg %p1947_p9  ;;  %p1954_p13 = por %p1953_p12, %p1952_p11 }
  0x3c   : > { %p1955_p0 = pnand %p1954_p13, %p1948_p10 }
  0x3e   : > { %1958 = shalt.err (!%p1955_p0)
}
  0x3f   : > { %1738 = dma.hbm_to_vmem [thread:$0]  (!%p2187_p5), %s2474_s6, 16, %s351_s26, [#allocation10]  }
  0x40   : > { %s37_s23 = sadd.s32 1, %s2073_s13  ;;  %s79_s21 = sadd.s32 1, %s2065_s11 }
  0x41   : > { %p38_p6 = scmp.ge.s32.totalorder %s37_s23, 2  ;;  %p86_p2 = scmp.ne.s32.totalorder %s2065_s11, %s2061_s10 }
  0x42   : > { %p87_p4 = scmp.eq.s32.totalorder %s2077_s14, 0  ;;  %p92_p7 = scmp.ne.s32.totalorder %s2061_s10, %s2057_s30 }
  0x43   : > { %s2495_s23 = smov (%p38_p6, %s37_s23), 0  ;;  %p1747_p5 = scmp.lt.s32.totalorder %s2077_s14, 2 }
  0x44   : > { %p2241_p8 = por %p87_p4, %p86_p2  ;;  %p2247_p9 = por %p93_p1, %p92_p7 }
  0x45   : > { %s74_s22 = ssub.s32 %s2073_s13, %s2495_s23  ;;  %s367_s24 = sand.u32 1, %s2077_s14  }
  0x46   : > { %p77_p10 = scmp.eq.s32.totalorder %s74_s22, 0  ;;  %s369_s25 = sand.u32 1, %s2065_s11  }
  0x47   : > { %s1577_s30 = sshll.u32 %s369_s25, 2  ;;  %s1578_s26 = sshll.u32 %s2073_s13, 6 }
  0x48   : > { %s2257_s20 = scalar_select %p77_p10, %s2065_s11, %s79_s21  }
  0x49   : > { %s377_s19 = scalar_lea.hbm %s2469_s1, %s1578_s26  ;;  %s371_s16 = scalar_lea.vmem [#allocation6], %s1577_s30 }
  0x4a   : > { %s379_s0 = sshll.u32 %s371_s16, 4  ;;  %p2265_p11 = pnand %p1747_p5, %p2241_p8  ;;  %s380_s0 = int_to_ptr.vmem [resolvable:$true] %s379_s0 }
  0x4b   : > { %s368_s22 = scalar_lea.sflag [#allocation7], %s367_s24  ;;  %s1972_s21 = scalar_lea.vmem %s380_s0, 64 }
  0x4c   : > { %p1961_p12 = pneg %p2265_p11  ;;  %p1973_p13 = scmp.ne.s32.totalorder %s380_s0, %s1972_s21 }
  0x4d   : > { %s2085_s25 = smov [#allocation6]  }
  0x4e   : > { %p1975_p0 = pnand %p1973_p13, %p1961_p12  ;;  %s1977_s5 = sshll.u32 %s2085_s25, 4  ;;  %s1978_s5 = int_to_ptr.vmem [resolvable:$false] %s1977_s5 }
  0x4f   : > { %s1979_s26 = scalar_lea.vmem %s1978_s5, 128  ;;  %p1980_p2 = scmp.lt.s32.totalorder %s380_s0, %s1978_s5 }
  0x50   : > { %p1976_p6 = pneg %p1975_p0  ;;  %p1981_p4 = scmp.lt.s32.totalorder %s1979_s26, %s1972_s21 }
  0x52   : > { %p1982_p7 = por %p1981_p4, %p1980_p2 }
  0x54   : > { %p1983_p8 = pnand %p1982_p7, %p1976_p6 }
  0x56   : > { %1986 = shalt.err (!%p1983_p8)
}
  0x57   : > { %1742 = dma.hbm_to_vmem [thread:$0]  (!%p2265_p11), %s377_s19, 64, %s380_s0, %s368_s22  }
  0x58   : > { %388 = sbr.rel (%p2179_p3) target bundleno = 1228 (0x4cc), region = 56 }
  0x5d   : > { %2036 = dma.done.wait (%p93_p1), [#allocation4], 128  }
  0x5e   : > { %2038 = vsyncadd (%p93_p1), [#allocation4], 4294967168  ;;  %s394_s5 = sand.u32 1, %s2174_s17   ;;  %s396_s29 = sand.u32 1, %s2061_s10  }
  0x5f   : > { %s1581_s24 = sshll.u32 %s396_s29, 2  ;;  %s395_s30 = scalar_lea.sflag [#allocation7], %s394_s5 }
  0x60   : > { %s398_s27 = scalar_lea.vmem [#allocation6], %s1581_s24 }
  0x61   : > { %2040 = dma.done.wait (%p2247_p9), %s395_s30, 64  }
  0x62   : > { %2042 = vsyncadd (%p2247_p9), %s395_s30, 4294967232 }
  0x63   : > { %2044 = dma.done.wait (%p93_p1), [#allocation7], 16  }
  0x64   : > { %2046 = vsyncadd (%p93_p1), [#allocation7], 4294967280 }
  0x65   : > { %2048 = dma.done.wait (%p93_p1), [#allocation10], 272  }
  0x66   : > { %2050 = vsyncadd (%p93_p1), [#allocation10], 4294967024  ;;  %vm480_vm0 = vcmask 1043456   ;;  %vm473_vm1 = vcmask 64512   ;;  %v462_v0 = vld [vmem:[%s398_s27] sm:$0xf]  ;;  %v566_v24 = vlaneseq }
  0x67   : > { %1702 = vmatprep.subr.msk.bf16.mxu0 %vm480_vm0, %v462_v0  ;;  %v482_v1 = vsel %vm480_vm0, %v462_v0, 0  ;;  %v1815_v2 = vld [vmem:[%s2470_s2] sm:$0xff]   ;;  %v1816_v3 = vld [vmem:[%s2470_s2 + $0x8] sm:$0xff]   ;;  %v2086_v5 = vmov 0.0   ;;  %s1597_s21 = sshll.u32 %s2069_s12, 2  ;;  %v1820_v8 = vld [vmem:[#allocation9] sm:$0xff]  }
  0x68   : > { %1651 = vmatpush3.bf16.msra.mxu0 %v482_v1  ;;  %1652 = vmatprep.mubr.msk.bf16.mxu0 %vm473_vm1, %v1815_v2  ;;  %v1817_v4 = vld [vmem:[%s2471_s3 + $0x8] sm:$0xff]   ;;  %v1818_v6 = vld [vmem:[%s2471_s3] sm:$0xff]   ;;  %vm539_vm2 = vcmask 261120   ;;  %vm2087_vm3 = vmmov 0   ;;  %s616_s25 = scalar_lea.vmem [#allocation3], %s1597_s21  ;;  %s1589_s26 = sshll.u32 %s2069_s12, 5 }
  0x69   : > { %1656 = vmatprep.subr.bf16.mxu1 %v2086_v5  ;;  %1664 = vmatprep.subr.bf16.mxu0 %v1817_v4  ;;  %v1819_v7 = vld [vmem:[#allocation9 + $0x8] sm:$0xff]   ;;  %s538_s5 = scalar_lea.vmem [#allocation2], %s1589_s26  ;;  %v2320_v25 = vand.u32 127, %v566_v24  ;;  %v2322_v26 = vshrl.u32 %v566_v24, 7  ;;  %v2088_v33 = vmov 1.0|1.0  }
  0x6a   : > { %1657 = vmatpush3.bf16.msra.mxu1 %v1817_v4  ;;  %1660 = vmatprep.mubr.msk.bf16.mxu1 %vm2087_vm3, %v2086_v5  ;;  %v617_v9 = vld [vmem:[%s616_s25] sm:$0xf]  ;;  %v2089_v34 = vmov 1966171168   ;;  %v1598_v36 = vld [vmem:[#allocation8] ss:$0 sm:$0xff] }
  0x6b   : > { %1653 = vmatmul.mubr.msk.bf16.vlgmr.msra.gmra.mxu0 %vm473_vm1, %v1816_v3  ;;  %1658 = vmatprep.subr.bf16.mxu1 %v2086_v5  ;;  %v578_v27 = vadd.s32 1, %v2320_v25  ;;  %v569_v28 = vadd.s32 16, %v2322_v26  ;;  %v570_v29 = vadd.s32 24, %v2322_v26  ;;  %v573_v30 = vmul.u32 8, %v2320_v25  ;;  %s1621_s0 = sshll.u32 %s2069_s12, 3  ;;  %s2090_s4 = smov [#allocation12]  }
  0x6c   : > { %1665 = vmatpush3.bf16.msra.mxu0 %v1817_v4  ;;  %v568_v32 = vadd.s32 8, %v2322_v26  ;;  %v827_v35 = vunpack.c.l.s4 %v2089_v34  ;;  %v876_v53 = vsub.s32 0, %v2322_v26  ;;  %s1431_s18 = sshll.u32 %s2090_s4, 4  ;;  %p1752_p1 = scmp.eq.s32.totalorder %s2174_s17, 1  ;;  %s1432_s18 = int_to_ptr.vmem [resolvable:$true] %s1431_s18 }
  0x6d   : > { %1666 = vmatprep.subr.bf16.mxu0 %v1818_v6  ;;  %v579_v31 = vmul.u32 8, %v578_v27  ;;  %vm576_vm4 = vcmp.ge.s32.totalorder %v569_v28, %v573_v30  ;;  %vm577_vm5 = vcmp.ge.s32.totalorder %v570_v29, %v573_v30  ;;  %vm574_vm11 = vcmp.ge.s32.totalorder %v2322_v26, %v573_v30  ;;  %s1421_s19 = scalar_lea.vmem [#allocation12], %s1621_s0  ;;  %s1987_s16 = scalar_lea.vmem %s1432_s18, 256 }
  0x6e   : > { %1659 = vmatpush3.bf16.msra.mxu1 %v1818_v6  ;;  %vm575_vm12 = vcmp.ge.s32.totalorder %v568_v32, %v573_v30  ;;  %v828_v38 = vunpack.c.0.s8 %v827_v35  ;;  %v598_v27 = vmul.u32 8, %v2322_v26  ;;  %p1988_p3 = scmp.ne.s32.totalorder %s1432_s18, %s1987_s16  ;;  %p1994_p10 = scmp.lt.s32.totalorder %s1432_s18, %s1432_s18 }
  0x6f   : > { %1672 = vmatprep.subr.bf16.mxu1 %v1819_v7  ;;  %vm582_vm6 = vcmp.lt.s32.totalorder %v569_v28, %v579_v31  ;;  %vm583_vm7 = vcmp.lt.s32.totalorder %v570_v29, %v579_v31  ;;  %vm580_vm13 = vcmp.lt.s32.totalorder %v2322_v26, %v579_v31  ;;  %vm581_vm14 = vcmp.lt.s32.totalorder %v568_v32, %v579_v31  ;;  %p1995_p11 = scmp.lt.s32.totalorder %s1987_s16, %s1987_s16 }
  0x70   : > { %1667 = vmatpush3.bf16.msra.mxu0 %v1818_v6  ;;  %vm586_vm8 = vmand %vm576_vm4, %vm582_vm6  ;;  %v831_v40 = vsub.s32 %v828_v38, %v2322_v26  ;;  %v600_v28 = vadd.s32 1, %v2322_v26  ;;  %vm599_vm4 = vcmp.ge.s32.totalorder %v2320_v25, %v598_v27  ;;  %p1989_p9 = pnand %p1988_p3, %p1752_p1 }
  0x71   : > { %1661 = vmatmul.mubr.msk.bf16.vlgmr.msra.gmra.mxu1 %vm539_vm2, %v617_v9  ;;  %vm587_vm9 = vmand %vm577_vm5, %vm583_vm7  ;;  %vm1189_vm7 = vcmask 1041408   ;;  %p1996_p12 = por %p1995_p11, %p1994_p10 }
  0x72   : > { %1673 = vmatpush3.bf16.msra.mxu1 %v1819_v7  ;;  %vm1609_vm10 = vmpackc.low %vm587_vm9, %vm586_vm8  ;;  %v601_v29 = vmul.u32 8, %v600_v28  ;;  %vm1011_vm8 = vcmask 27648   ;;  %vm1258_vm9 = vcmask 257024   ;;  %p1990_p5 = pneg %p1989_p9 }
  0x73   : > { %1674 = vmatprep.subr.bf16.mxu1 %v1820_v8  ;;  %1680 = vmatprep.subr.msk.bf16.mxu0 %vm1609_vm10, %v2088_v33  ;;  %vm584_vm15 = vmand %vm574_vm11, %vm580_vm13  ;;  %vm1352_vm11 = vcmask 1042434   ;;  %vm1356_vm13 = vcmask 1044484  }
  0x74   : > { %vm585_vm0 = vmand %vm575_vm12, %vm581_vm14  ;;  %vm602_vm5 = vcmp.lt.s32.totalorder %v2320_v25, %v601_v29  ;;  %vm1354_vm12 = vcmask 1043459   ;;  %vm1358_vm14 = vcmask 1045509   ;;  %p1997_p13 = pnand %p1996_p12, %p1990_p5 }
  0x75   : > { %vm1611_vm1 = vmpackc.low %vm585_vm0, %vm584_vm15  ;;  %vm1360_vm15 = vcmask 1046534   ;;  %vm1362_vm0 = vcmask 1047559  }
  0x76   : > { %1675 = vmatpush3.bf16.msra.mxu1 %v1820_v8  ;;  %vm603_vm6 = vmand %vm599_vm4, %vm602_vm5 }
  0x77   : > { %v1595_v30 = vsel %vm603_vm6, 1.0, %v2086_v5 }
  0x78   : > { %v606_v31 = vpack.c.bf16 %v1595_v30, %v1595_v30 }
  0x7a   : > { %1703 = vmatprep.subr.msk.bf16.mxu1 %vm1189_vm7, %v606_v31  ;;  %v1191_v32 = vsel %vm1189_vm7, %v606_v31, 0 }
 0x12b   : > { %v1654_v10 = vpop.f32.mrf.mxu0 }
 0x12c   : > { %542 = vst.msk [vmem:[%s538_s5 + $0x10] sm:$0xff] %vm539_vm2, %v1654_v10 }
 0x12d   : > { %v518_v11 = vpop.f32.mrf.mxu0 }
 0x12e   : > { %540 = vst.msk [vmem:[%s538_s5] sm:$0xff] %vm539_vm2, %v518_v11 }
 0x12f   : > { %v1655_v12 = vpop.f32.mrf.mxu0 }
 0x130   : > { %543 = vst.msk [vmem:[%s538_s5 + $0x18] sm:$0xff] %vm539_vm2, %v1655_v12 }
 0x131   : > { %v521_v13 = vpop.f32.mrf.mxu0  ;;  %v679_v20 = vpop.f32.mrf.mxu1 }
 0x132   : > { %541 = vst.msk [vmem:[%s538_s5 + $0x8] sm:$0xff] %vm539_vm2, %v521_v13  ;;  %v680_v37 = vadd.f32 %v1598_v36, %v679_v20 }
 0x133   : > { %v611_v18 = vld [vmem:[%s538_s5 + $0x10] sm:$0xff]  ;;  %v1662_v21 = vpop.f32.mrf.mxu1 }
 0x134   : > { %v825_v39 = vcombine.high %v680_v37, %v680_v37  ;;  %v832_v42 = vrot.slane %v680_v37, %v831_v40 }
 0x135   : > { %v609_v15 = vld [vmem:[%s538_s5] sm:$0xff]  ;;  %v682_v22 = vpop.f32.mrf.mxu1 }
 0x136   : > { %v839_v41 = vrot.slane %v825_v39, %v831_v40  ;;  %v840_v44 = vcombine.high %v832_v42, %v832_v42  ;;  %v848_v46 = vrot.slane %v832_v42, %v831_v40 }
 0x137   : > { %v612_v14 = vld [vmem:[%s538_s5 + $0x18] sm:$0xff]  ;;  %v1663_v23 = vpop.f32.mrf.mxu1 }
 0x138   : > { %v614_v19 = vpack.c.bf16 %v612_v14, %v611_v18  ;;  %v841_v43 = vcombine.high %v839_v41, %v839_v41  ;;  %v862_v47 = vrot.slane %v840_v44, %v831_v40  ;;  %v855_v49 = vrot.slane %v839_v41, %v831_v40 }
 0x139   : > { %v610_v16 = vld [vmem:[%s538_s5 + $0x8] sm:$0xff]  ;;  %v870_v57 = vcombine.high %v848_v46, %v848_v46  ;;  %v877_v4 = vrot.slane %v848_v46, %v876_v53 }
 0x13a   : > { %v613_v17 = vpack.c.bf16 %v610_v16, %v609_v15  ;;  %v869_v45 = vrot.slane %v841_v43, %v831_v40  ;;  %v871_v55 = vcombine.high %v855_v49, %v855_v49  ;;  %v872_v58 = vcombine.high %v862_v47, %v862_v47 }
 0x13b   : > { %v881_v62 = vrot.slane %v862_v47, %v876_v53  ;;  %v885_v7 = vrot.slane %v870_v57, %v876_v53  ;;  %v893_v9 = vrot.slane %v855_v49, %v876_v53 }
 0x13c   : > { %1668 = vmatprep.mubr.msk.bf16.mxu0 %vm539_vm2, %v613_v17  ;;  %1676 = vmatprep.mubr.msk.bf16.mxu1 %vm539_vm2, %v613_v17  ;;  %v873_v50 = vcombine.high %v869_v45, %v869_v45  ;;  %v897_v1 = vrot.slane %v869_v45, %v876_v53  ;;  %v901_v3 = vrot.slane %v871_v55, %v876_v53 }
 0x13d   : > { %1669 = vmatmul.mubr.msk.bf16.vlgmr.msra.gmra.mxu0 %vm539_vm2, %v614_v19  ;;  %1677 = vmatmul.mubr.msk.bf16.vlgmr.msra.gmra.mxu1 %vm539_vm2, %v614_v19  ;;  %v889_v8 = vrot.slane %v872_v58, %v876_v53 }
 0x13e   : > { %1681 = vmatpush3.bf16.msk.msra.mxu0 %vm1609_vm10, %v2088_v33  ;;  %v905_v60 = vrot.slane %v873_v50, %v876_v53  ;;  %1689 = vmatpush3.bf16.msra.mxu1 %v1191_v32  ;;  %vm1350_vm10 = vcmask 1041409  }
 0x13f   : > { %1682 = vmatprep.subr.msk.bf16.mxu0 %vm1611_vm1, %v2088_v33 }
 0x142   : > { %1683 = vmatpush3.bf16.msk.msra.mxu0 %vm1611_vm1, %v2088_v33 }
 0x143   : > { %1694 = vmatprep.subr.bf16.mxu0 %v2086_v5 }
 0x1fd   : > { %v1670_v48 = vpop.f32.mrf.mxu0 }
 0x1fe   : > { %v734_v52 = vadd.f32 %v1670_v48, %v1598_v36 }
 0x1ff   : > { %v725_v51 = vpop.f32.mrf.mxu0 }
 0x200   : > { %v726_v54 = vadd.f32 %v1598_v36, %v725_v51  ;;  %v818_v0 = vcombine.high %v734_v52, %v734_v52  ;;  %v918_v18 = vmul.f32 %v893_v9, %v734_v52 }
 0x201   : > { %v1671_v56 = vpop.f32.mrf.mxu0 }
 0x202   : > { %v737_v59 = vadd.f32 %v1671_v56, %v1598_v36  ;;  %v816_v61 = vcombine.high %v726_v54, %v726_v54  ;;  %v919_v13 = vmul.f32 %v897_v1, %v818_v0  ;;  %v914_v15 = vmul.f32 %v877_v4, %v726_v54 }
 0x203   : > { %v728_v63 = vpop.f32.mrf.mxu0 }
 0x204   : > { %v819_v2 = vcombine.high %v737_v59, %v737_v59  ;;  %v729_v6 = vadd.f32 %v1598_v36, %v728_v63  ;;  %v915_v11 = vmul.f32 %v881_v62, %v816_v61  ;;  %v920_v14 = vmul.f32 %v901_v3, %v737_v59 }
 0x205   : > { %v932_v22 = vcombine.low %v918_v18, %v919_v13 }
 0x206   : > { %v921_v10 = vmul.f32 %v905_v60, %v819_v2  ;;  %v817_v12 = vcombine.high %v729_v6, %v729_v6  ;;  %v916_v16 = vmul.f32 %v885_v7, %v729_v6  ;;  %v930_v20 = vcombine.low %v914_v15, %v915_v11 }
 0x208   : > { %v917_v17 = vmul.f32 %v889_v8, %v817_v12  ;;  %v933_v19 = vcombine.low %v920_v14, %v921_v10 }
 0x20a   : > { %v931_v21 = vcombine.low %v916_v16, %v917_v17  ;;  %v939_v24 = vpack.c.bf16 %v933_v19, %v932_v22 }
 0x20c   : > { %v938_v23 = vpack.c.bf16 %v931_v21, %v930_v20 }
 0x20e   : > { %1684 = vmatprep.mubr.msk.bf16.mxu0 %vm539_vm2, %v938_v23 }
 0x20f   : > { %1685 = vmatmul.mubr.msk.bf16.vlgmr.msra.gmra.mxu0 %vm539_vm2, %v939_v24 }
 0x210   : > { %1698 = vmatprep.mubr.msk.bf16.mxu0 %vm2087_vm3, %v2086_v5  ;;  %vm1182_vm3 = vcmask 31744  }
 0x2cf   : > { %v1686_v33 = vpop.f32.mrf.mxu0 }
 0x2d0   : > { %v997_v34 = vmul.f32 0.17677669, %v1686_v33 }
 0x2d1   : > { %v980_v35 = vpop.f32.mrf.mxu0 }
 0x2d2   : > { %v2343_v36 = vcombine.high %v997_v34, %v997_v34  ;;  %v1040_v26 = vsel %vm1011_vm8, %v997_v34, -inf  ;;  %v2346_v37 = vmul.f32 0.17677669, %v980_v35 }
 0x2d3   : > { %v1041_v38 = vrot.slane %v1040_v26, 4  ;;  %v1687_v25 = vpop.f32.mrf.mxu0 }
 0x2d4   : > { %v1047_v39 = vsel %vm1011_vm8, %v2343_v36, -inf  ;;  %v2352_v40 = vcombine.high %v2346_v37, %v2346_v37  ;;  %v1012_v41 = vsel %vm1011_vm8, %v2346_v37, -inf  ;;  %v2356_v42 = vmul.f32 0.17677669, %v1687_v25 }
 0x2d5   : > { %v1042_v43 = vmax.f32 %v1040_v26, %v1041_v38  ;;  %v1048_v44 = vrot.slane %v1047_v39, 4  ;;  %v1013_v45 = vrot.slane %v1012_v41, 4  ;;  %v983_v46 = vpop.f32.mrf.mxu0 }
 0x2d6   : > { %v1019_v47 = vsel %vm1011_vm8, %v2352_v40, -inf  ;;  %v2362_v48 = vcombine.high %v2356_v42, %v2356_v42  ;;  %v1054_v49 = vsel %vm1011_vm8, %v2356_v42, -inf  ;;  %v2366_v50 = vmul.f32 0.17677669, %v983_v46 }
 0x2d7   : > { %v1043_v51 = vrot.slane %v1042_v43, 2  ;;  %v1049_v52 = vmax.f32 %v1047_v39, %v1048_v44  ;;  %v1014_v53 = vmax.f32 %v1012_v41, %v1013_v45  ;;  %v1020_v54 = vrot.slane %v1019_v47, 4 }
 0x2d8   : > { %v1055_v55 = vrot.slane %v1054_v49, 4  ;;  %v1061_v56 = vsel %vm1011_vm8, %v2362_v48, -inf  ;;  %v2372_v57 = vcombine.high %v2366_v50, %v2366_v50  ;;  %v1026_v58 = vsel %vm1011_vm8, %v2366_v50, -inf }
 0x2d9   : > { %v1044_v59 = vmax.f32 %v1042_v43, %v1043_v51  ;;  %v1050_v60 = vrot.slane %v1049_v52, 2  ;;  %v1015_v61 = vrot.slane %v1014_v53, 2  ;;  %v1021_v62 = vmax.f32 %v1019_v47, %v1020_v54 }
 0x2da   : > { %v1056_v63 = vmax.f32 %v1054_v49, %v1055_v55  ;;  %v1062_v0 = vrot.slane %v1061_v56, 4  ;;  %v1027_v1 = vrot.slane %v1026_v58, 4  ;;  %v1033_v2 = vsel %vm1011_vm8, %v2372_v57, -inf }
 0x2db   : > { %v1045_v3 = vrot.slane %v1044_v59, 1  ;;  %v1051_v4 = vmax.f32 %v1049_v52, %v1050_v60  ;;  %v1016_v6 = vmax.f32 %v1014_v53, %v1015_v61  ;;  %v1022_v7 = vrot.slane %v1021_v62, 2 }
 0x2dc   : > { %v1057_v8 = vrot.slane %v1056_v63, 2  ;;  %v1063_v9 = vmax.f32 %v1061_v56, %v1062_v0  ;;  %v1028_v10 = vmax.f32 %v1026_v58, %v1027_v1  ;;  %v1034_v11 = vrot.slane %v1033_v2, 4 }
 0x2dd   : > { %v1046_v12 = vmax.f32 %v1044_v59, %v1045_v3  ;;  %v1052_v13 = vrot.slane %v1051_v4, 1  ;;  %v1017_v14 = vrot.slane %v1016_v6, 1  ;;  %v1023_v15 = vmax.f32 %v1021_v62, %v1022_v7 }
 0x2de   : > { %v1058_v16 = vmax.f32 %v1056_v63, %v1057_v8  ;;  %v1064_v17 = vrot.slane %v1063_v9, 2  ;;  %v1029_v18 = vrot.slane %v1028_v10, 2  ;;  %v1035_v19 = vmax.f32 %v1033_v2, %v1034_v11 }
 0x2df   : > { %v1053_v20 = vmax.f32 %v1051_v4, %v1052_v13  ;;  %v1072_v21 = vsub.f32 %v997_v34, %v1046_v12  ;;  %v1018_v22 = vmax.f32 %v1016_v6, %v1017_v14  ;;  %v1024_v23 = vrot.slane %v1023_v15, 1 }
 0x2e0   : > { %v1059_v24 = vrot.slane %v1058_v16, 1  ;;  %v1065_v27 = vmax.f32 %v1063_v9, %v1064_v17  ;;  %v1030_v28 = vmax.f32 %v1028_v10, %v1029_v18  ;;  %v1036_v29 = vrot.slane %v1035_v19, 2 }
 0x2e1   : > { %v1073_v30 = vsub.f32 %v2343_v36, %v1053_v20  ;;  %v1084_v31 = vmul.f32 1.442695, %v1072_v21  ;;  %v1025_v32 = vmax.f32 %v1023_v15, %v1024_v23  ;;  %v1068_v33 = vsub.f32 %v2346_v37, %v1018_v22 }
 0x2e2   : > { %v1060_v35 = vmax.f32 %v1058_v16, %v1059_v24  ;;  %v1066_v26 = vrot.slane %v1065_v27, 1  ;;  %v1031_v38 = vrot.slane %v1030_v28, 1  ;;  %v1037_v25 = vmax.f32 %v1035_v19, %v1036_v29 }
 0x2e3   : > { %1823 = vpow2.f32 %v1084_v31  ;;  %v1086_v39 = vmul.f32 1.442695, %v1073_v30  ;;  %v1069_v34 = vsub.f32 %v2352_v40, %v1025_v32  ;;  %v1076_v41 = vmul.f32 1.442695, %v1068_v33 }
 0x2e4   : > { %v1067_v43 = vmax.f32 %v1065_v27, %v1066_v26  ;;  %v1074_v44 = vsub.f32 %v2356_v42, %v1060_v35  ;;  %v1032_v45 = vmax.f32 %v1030_v28, %v1031_v38  ;;  %v1038_v46 = vrot.slane %v1037_v25, 1 }
 0x2e5   : > { %1825 = vpow2.f32 %v1086_v39  ;;  %v1078_v36 = vmul.f32 1.442695, %v1069_v34 }
 0x2e6   : > { %1827 = vpow2.f32 %v1076_v41  ;;  %v1075_v47 = vsub.f32 %v2362_v48, %v1067_v43  ;;  %v1088_v37 = vmul.f32 1.442695, %v1074_v44  ;;  %v1039_v49 = vmax.f32 %v1037_v25, %v1038_v46 }
 0x2e7   : > { %1829 = vpow2.f32 %v1078_v36  ;;  %v1070_v51 = vsub.f32 %v2366_v50, %v1032_v45 }
 0x2e8   : > { %1831 = vpow2.f32 %v1088_v37  ;;  %v1090_v52 = vmul.f32 1.442695, %v1075_v47  ;;  %v1071_v40 = vsub.f32 %v2372_v57, %v1039_v49 }
 0x2e9   : > { %v1080_v53 = vmul.f32 1.442695, %v1070_v51 }
 0x2ea   : > { %1833 = vpow2.f32 %v1090_v52  ;;  %v1082_v54 = vmul.f32 1.442695, %v1071_v40 }
 0x2eb   : > { %1835 = vpow2.f32 %v1080_v53 }
 0x2ec   : > { %1837 = vpow2.f32 %v1082_v54 }
 0x2f0   : > { %v2385_v42 = vpop.eup %1823 }
 0x2f1   : > { %v1120_v55 = vsel %vm1011_vm8, %v2385_v42, 0.0 }
 0x2f2   : > { %v2389_v48 = vpop.eup %1825  ;;  %v1121_v56 = vrot.slane %v1120_v55, 4 }
 0x2f3   : > { %v2391_v58 = vpop.eup %1827  ;;  %v1127_v50 = vsel %vm1011_vm8, %v2389_v48, 0.0 }
 0x2f4   : > { %v2395_v59 = vpop.eup %1829  ;;  %v1122_v57 = vadd.f32 %v1121_v56, %v1120_v55  ;;  %v1128_v60 = vrot.slane %v1127_v50, 4  ;;  %v1092_v61 = vsel %vm1011_vm8, %v2391_v58, 0.0 }
 0x2f5   : > { %v2399_v62 = vpop.eup %1831  ;;  %v1093_v63 = vrot.slane %v1092_v61, 4  ;;  %v1099_v0 = vsel %vm1011_vm8, %v2395_v59, 0.0 }
 0x2f6   : > { %v1129_v1 = vadd.f32 %v1128_v60, %v1127_v50  ;;  %v1100_v2 = vrot.slane %v1099_v0, 4  ;;  %v1134_v3 = vsel %vm1011_vm8, %v2399_v62, 0.0  ;;  %v1123_v9 = vrot.slane %v1122_v57, 2 }
 0x2f7   : > { %v1834_v4 = vpop.eup %1833  ;;  %v1094_v6 = vadd.f32 %v1093_v63, %v1092_v61  ;;  %v1135_v7 = vrot.slane %v1134_v3, 4 }
 0x2f8   : > { %v2405_v8 = vpop.eup %1835  ;;  %v1130_v10 = vrot.slane %v1129_v1, 2  ;;  %v1101_v11 = vadd.f32 %v1100_v2, %v1099_v0  ;;  %v1141_v12 = vsel %vm1011_vm8, %v1834_v4, 0.0  ;;  %v1124_v27 = vadd.f32 %v1123_v9, %v1122_v57 }
 0x2f9   : > { %v1838_v13 = vpop.eup %1837  ;;  %v1095_v14 = vrot.slane %v1094_v6, 2  ;;  %v1136_v15 = vadd.f32 %v1135_v7, %v1134_v3  ;;  %v1142_v16 = vrot.slane %v1141_v12, 4  ;;  %v1106_v17 = vsel %vm1011_vm8, %v2405_v8, 0.0 }
 0x2fa   : > { %v1131_v18 = vadd.f32 %v1130_v10, %v1129_v1  ;;  %v1102_v19 = vrot.slane %v1101_v11, 2  ;;  %v1107_v20 = vrot.slane %v1106_v17, 4  ;;  %v1113_v24 = vsel %vm1011_vm8, %v1838_v13, 0.0 }
 0x2fb   : > { %v1096_v21 = vadd.f32 %v1095_v14, %v1094_v6  ;;  %v1137_v22 = vrot.slane %v1136_v15, 2  ;;  %v1143_v23 = vadd.f32 %v1142_v16, %v1141_v12  ;;  %v1114_v35 = vrot.slane %v1113_v24, 4 }
 0x2fc   : > { %v1132_v28 = vrot.slane %v1131_v18, 1  ;;  %v1103_v29 = vadd.f32 %v1102_v19, %v1101_v11  ;;  %v1108_v30 = vadd.f32 %v1107_v20, %v1106_v17  ;;  %v1125_v44 = vrot.slane %v1124_v27, 1 }
 0x2fd   : > { %v1097_v31 = vrot.slane %v1096_v21, 1  ;;  %v1138_v32 = vadd.f32 %v1137_v22, %v1136_v15  ;;  %v1144_v33 = vrot.slane %v1143_v23, 2  ;;  %v1115_v43 = vadd.f32 %v1114_v35, %v1113_v24 }
 0x2fe   : > { %v1133_v26 = vadd.f32 %v1132_v28, %v1131_v18  ;;  %v1104_v38 = vrot.slane %v1103_v29, 1  ;;  %v1109_v25 = vrot.slane %v1108_v30, 2  ;;  %v1126_v40 = vadd.f32 %v1125_v44, %v1124_v27 }
 0x2ff   : > { %v1098_v39 = vadd.f32 %v1097_v31, %v1096_v21  ;;  %v1139_v34 = vrot.slane %v1138_v32, 1  ;;  %v1145_v41 = vadd.f32 %v1144_v33, %v1143_v23  ;;  %v1116_v47 = vrot.slane %v1115_v43, 2 }
 0x300   : > { %v1110_v45 = vadd.f32 %v1109_v25, %v1108_v30  ;;  %v1105_v46 = vadd.f32 %v1104_v38, %v1103_v29  ;;  %1839 = vrcp.f32 %v1133_v26 }
 0x301   : > { %v1146_v36 = vrot.slane %v1145_v41, 1  ;;  %v1140_v37 = vadd.f32 %v1139_v34, %v1138_v32  ;;  %v1117_v52 = vadd.f32 %v1116_v47, %v1115_v43  ;;  %1841 = vrcp.f32 %v1098_v39 }
 0x302   : > { %v1111_v49 = vrot.slane %v1110_v45, 1  ;;  %1843 = vrcp.f32 %v1105_v46 }
 0x303   : > { %v1147_v51 = vadd.f32 %v1146_v36, %v1145_v41  ;;  %v1118_v54 = vrot.slane %v1117_v52, 1 }
 0x304   : > { %v1112_v53 = vadd.f32 %v1111_v49, %v1110_v45 }
 0x305   : > { %1845 = vrcp.f32 %v1147_v51  ;;  %v1119_v55 = vadd.f32 %v1118_v54, %v1117_v52 }
 0x306   : > { %1847 = vrcp.f32 %v1140_v37 }
 0x307   : > { %1849 = vrcp.f32 %v1112_v53 }
 0x308   : > { %1851 = vrcp.f32 %v1126_v40 }
 0x309   : > { %1853 = vrcp.f32 %v1119_v55 }
 0x30d   : > { %v1840_v56 = vpop.eup %1839 }
 0x30e   : > { %v1842_v50 = vpop.eup %1841  ;;  %v1161_v6 = vmul.f32 %v1840_v56, %v2389_v48  ;;  %v1821_v48 = vld [vmem:[%s2475_s7 + $0x8] sm:$0xff]  }
 0x30f   : > { %v1844_v57 = vpop.eup %1843  ;;  %v1156_v9 = vmul.f32 %v1842_v50, %v2391_v58  ;;  %1695 = vmatpush3.bf16.msra.mxu0 %v1821_v48  ;;  %v1678_v58 = vpop.f32.mrf.mxu1 }
 0x310   : > { %v1157_v2 = vmul.f32 %v1844_v57, %v2395_v59  ;;  %1696 = vmatprep.subr.bf16.mxu0 %v2086_v5 }
 0x311   : > { %v797_v59 = vpop.f32.mrf.mxu1 }
 0x312   : > { %v1846_v60 = vpop.eup %1845  ;;  %v1172_v15 = vcombine.low %v1156_v9, %v1157_v2 }
 0x313   : > { %v1848_v61 = vpop.eup %1847  ;;  %v1163_v0 = vmul.f32 %v1846_v60, %v1834_v4 }
 0x314   : > { %v1850_v63 = vpop.eup %1849  ;;  %v1162_v7 = vmul.f32 %v1848_v61, %v2399_v62  ;;  %v1679_v62 = vpop.f32.mrf.mxu1 }
 0x315   : > { %v1852_v1 = vpop.eup %1851  ;;  %v1158_v10 = vmul.f32 %v1850_v63, %v2405_v8  ;;  %v1604_v8 = vld [vmem:[#allocation11] ss:$0 sm:$0xff] }
 0x316   : > { %v1854_v3 = vpop.eup %1853  ;;  %v1160_v12 = vmul.f32 %v1852_v1, %v2385_v42  ;;  %v1175_v14 = vcombine.low %v1162_v7, %v1163_v0  ;;  %v1822_v42 = vld [vmem:[%s2475_s7] sm:$0xff]   ;;  %v806_v19 = vadd.f32 %v1678_v58, %v1604_v8  ;;  %v798_v21 = vadd.f32 %v1604_v8, %v797_v59 }
 0x317   : > { %v1159_v11 = vmul.f32 %v1854_v3, %v1838_v13  ;;  %1697 = vmatpush3.bf16.msra.mxu0 %v1822_v42  ;;  %v800_v13 = vpop.f32.mrf.mxu1  ;;  %v809_v24 = vadd.f32 %v1679_v62, %v1604_v8 }
 0x318   : > { %v1174_v4 = vcombine.low %v1160_v12, %v1161_v6  ;;  %v801_v29 = vadd.f32 %v1604_v8, %v800_v13 }
 0x319   : > { %v1173_v16 = vcombine.low %v1158_v10, %v1159_v11 }
 0x31a   : > { %v1181_v18 = vpack.c.bf16 %v1175_v14, %v1174_v4 }
 0x31b   : > { %v1180_v17 = vpack.c.bf16 %v1173_v16, %v1172_v15 }
 0x31d   : > { %1690 = vmatprep.mubr.msk.bf16.mxu1 %vm1182_vm3, %v1180_v17 }
 0x31e   : > { %1691 = vmatmul.mubr.msk.bf16.vlgmr.msra.gmra.mxu1 %vm1182_vm3, %v1181_v18 }
 0x3de   : > { %v1692_v20 = vpop.f32.mrf.mxu1 }
 0x3df   : > { %v1244_v22 = vmul.f32 %v1692_v20, %v806_v19 }
 0x3e0   : > { %v1227_v23 = vpop.f32.mrf.mxu1 }
 0x3e1   : > { %v1252_v27 = vcombine.high %v1244_v22, %v1244_v22  ;;  %v1287_v5 = vsel %vm1258_vm9, %v1244_v22, 0.0  ;;  %v1242_v28 = vmul.f32 %v1227_v23, %v798_v21 }
 0x3e2   : > { %v1288_v30 = vrot.slane %v1287_v5, 4  ;;  %v1693_v31 = vpop.f32.mrf.mxu1 }
 0x3e3   : > { %v1294_v32 = vsel %vm1258_vm9, %v1252_v27, 0.0  ;;  %v1250_v33 = vcombine.high %v1242_v28, %v1242_v28  ;;  %v1259_v35 = vsel %vm1258_vm9, %v1242_v28, 0.0  ;;  %v1245_v26 = vmul.f32 %v1693_v31, %v809_v24 }
 0x3e4   : > { %v1289_v38 = vadd.f32 %v1288_v30, %v1287_v5  ;;  %v1295_v25 = vrot.slane %v1294_v32, 4  ;;  %v1260_v39 = vrot.slane %v1259_v35, 4  ;;  %v1230_v34 = vpop.f32.mrf.mxu1 }
 0x3e5   : > { %v1266_v41 = vsel %vm1258_vm9, %v1250_v33, 0.0  ;;  %v1253_v43 = vcombine.high %v1245_v26, %v1245_v26  ;;  %v1301_v44 = vsel %vm1258_vm9, %v1245_v26, 0.0  ;;  %v1243_v45 = vmul.f32 %v1230_v34, %v801_v29 }
 0x3e6   : > { %v1290_v46 = vrot.slane %v1289_v38, 2  ;;  %v1296_v36 = vadd.f32 %v1295_v25, %v1294_v32  ;;  %v1261_v47 = vadd.f32 %v1260_v39, %v1259_v35  ;;  %v1267_v37 = vrot.slane %v1266_v41, 4 }
 0x3e7   : > { %v1302_v49 = vrot.slane %v1301_v44, 4  ;;  %v1308_v51 = vsel %vm1258_vm9, %v1253_v43, 0.0  ;;  %v1251_v52 = vcombine.high %v1243_v45, %v1243_v45  ;;  %v1273_v40 = vsel %vm1258_vm9, %v1243_v45, 0.0 }
 0x3e8   : > { %v1297_v53 = vrot.slane %v1296_v36, 2  ;;  %v1262_v54 = vrot.slane %v1261_v47, 2  ;;  %v1268_v55 = vadd.f32 %v1267_v37, %v1266_v41  ;;  %v1309_v50 = vrot.slane %v1308_v51, 4 }
 0x3e9   : > { %v1303_v56 = vadd.f32 %v1302_v49, %v1301_v44  ;;  %v1274_v57 = vrot.slane %v1273_v40, 4  ;;  %v1280_v60 = vsel %vm1258_vm9, %v1251_v52, 0.0  ;;  %v1291_v61 = vadd.f32 %v1290_v46, %v1289_v38 }
 0x3ea   : > { %v1298_v63 = vadd.f32 %v1297_v53, %v1296_v36  ;;  %v1263_v0 = vadd.f32 %v1262_v54, %v1261_v47  ;;  %v1269_v1 = vrot.slane %v1268_v55, 2  ;;  %v1310_v3 = vadd.f32 %v1309_v50, %v1308_v51  ;;  %v1617_v53 = vld [vmem:[%s2476_s8] ss:$0 sm:$0xff] }
 0x3eb   : > { %v1304_v2 = vrot.slane %v1303_v56, 2  ;;  %v1275_v6 = vadd.f32 %v1274_v57, %v1273_v40  ;;  %v1281_v7 = vrot.slane %v1280_v60, 4  ;;  %v1292_v16 = vrot.slane %v1291_v61, 1 }
 0x3ec   : > { %v1264_v9 = vrot.slane %v1263_v0, 1  ;;  %v1270_v10 = vadd.f32 %v1269_v1, %v1268_v55  ;;  %v1311_v12 = vrot.slane %v1310_v3, 2  ;;  %v1299_v18 = vrot.slane %v1298_v63, 1 }
 0x3ed   : > { %v1305_v11 = vadd.f32 %v1304_v2, %v1303_v56  ;;  %v1276_v14 = vrot.slane %v1275_v6, 2  ;;  %v1282_v15 = vadd.f32 %v1281_v7, %v1280_v60  ;;  %v1293_v21 = vadd.f32 %v1292_v16, %v1291_v61 }
 0x3ee   : > { %v1265_v4 = vadd.f32 %v1264_v9, %v1263_v0  ;;  %v1271_v17 = vrot.slane %v1270_v10, 1  ;;  %v1312_v48 = vadd.f32 %v1311_v12, %v1310_v3  ;;  %v1300_v23 = vadd.f32 %v1299_v18, %v1298_v63 }
 0x3ef   : > { %v1277_v42 = vadd.f32 %v1276_v14, %v1275_v6  ;;  %v1283_v58 = vrot.slane %v1282_v15, 2  ;;  %v1306_v8 = vrot.slane %v1305_v11, 1  ;;  %v1319_v33 = vpack.c.bf16 %v1293_v21, %v1293_v21 }
 0x3f0   : > { %v1272_v59 = vadd.f32 %v1271_v17, %v1270_v10  ;;  %v1315_v62 = vpack.c.bf16 %v1265_v4, %v1265_v4  ;;  %v1313_v13 = vrot.slane %v1312_v48, 1  ;;  %v1320_v26 = vpack.c.bf16 %v1300_v23, %v1300_v23 }
 0x3f1   : > { %v1278_v19 = vrot.slane %v1277_v42, 1  ;;  %v1284_v20 = vadd.f32 %v1283_v58, %v1282_v15  ;;  %v1307_v29 = vadd.f32 %v1306_v8, %v1305_v11  ;;  %v1346_v44 = vunpack.c.l.b16 %v1319_v33 }
 0x3f2   : > { %v1316_v22 = vpack.c.bf16 %v1272_v59, %v1272_v59  ;;  %v1342_v5 = vunpack.c.l.b16 %v1315_v62  ;;  %v1314_v30 = vadd.f32 %v1313_v13, %v1312_v48  ;;  %v1347_v45 = vunpack.c.l.b16 %v1320_v26 }
 0x3f3   : > { %v1279_v24 = vadd.f32 %v1278_v19, %v1277_v42  ;;  %v1285_v27 = vrot.slane %v1284_v20, 1  ;;  %v1321_v39 = vpack.c.bf16 %v1307_v29, %v1307_v29 }
 0x3f4   : > { %v1343_v28 = vunpack.c.l.b16 %v1316_v22  ;;  %v1322_v34 = vpack.c.bf16 %v1314_v30, %v1314_v30 }
 0x3f5   : > { %v1286_v31 = vadd.f32 %v1285_v27, %v1284_v20  ;;  %v1317_v32 = vpack.c.bf16 %v1279_v24, %v1279_v24  ;;  %v1348_v36 = vunpack.c.l.b16 %v1321_v39 }
 0x3f6   : > { %v1351_v35 = vsel %vm1350_vm10, %v1343_v28, %v1342_v5  ;;  %v1349_v37 = vunpack.c.l.b16 %v1322_v34 }
 0x3f7   : > { %v1318_v38 = vpack.c.bf16 %v1286_v31, %v1286_v31  ;;  %v1344_v25 = vunpack.c.l.b16 %v1317_v32 }
 0x3f9   : > { %v1345_v41 = vunpack.c.l.b16 %v1318_v38  ;;  %v1353_v43 = vsel %vm1352_vm11, %v1344_v25, %v1351_v35 }
 0x3fb   : > { %v1355_v46 = vsel %vm1354_vm12, %v1345_v41, %v1353_v43 }
 0x3fc   : > { %v1357_v47 = vsel %vm1356_vm13, %v1346_v44, %v1355_v46 }
 0x3fd   : > { %v1359_v49 = vsel %vm1358_vm14, %v1347_v45, %v1357_v47 }
 0x3fe   : > { %v1361_v51 = vsel %vm1360_vm15, %v1348_v36, %v1359_v49 }
 0x3ff   : > { %v1363_v52 = vsel %vm1362_vm0, %v1349_v37, %v1361_v51 }
 0x400   : > { %v1364_v40 = vpack.c.b16 %v1363_v52, %v1363_v52 }
 0x402   : > { %1699 = vmatmul.mubr.msk.bf16.vlgmr.msra.gmra.mxu0 %vm539_vm2, %v1364_v40 }
 0x4c2   : > { %v1414_v54 = vpop.f32.mrf.mxu0 }
 0x4c3   : > { %v1415_v55 = vadd.f32 %v1617_v53, %v1414_v54 }
 0x4c4   : > { %v1700_v56 = vpop.f32.mrf.mxu0 }
 0x4c5   : > { %1422 = vst.msk [vmem:[%s1421_s19] sm:$0xff] %vm539_vm2, %v1415_v55 }
 0x4c6   : > { %v1417_v50 = vpop.f32.mrf.mxu0 }
 0x4c7   : > { %2000 = shalt.err (!%p1997_p13)
}
 0x4c8   : > { %s2091_s12 = smov 128   ;;  %s2092_s22 = smov 8   ;;  %v1701_v57 = vpop.f32.mrf.mxu0 }
 0x4c9   : > { %1723 = dma.vmem_to_hbm [thread:$0]  (%p1752_p1), %s1432_s18, 256, %s2477_s9, [#allocation5], %s2091_s12, %s2091_s12, %s2092_s22  }
 0x4ca   : > { %2052 = dma.done.wait (%p1752_p1), [#allocation5], 256  }
 0x4cb   : > { %2054 = vsyncadd (%p1752_p1), [#allocation5], 4294967040 }
 0x4cc PF: > { %s25_s14 = sadd.s32 1, %s2077_s14   ;;  %s2489_s30 = smov %s2061_s10 }
 0x4cd   : > { %p22_p0 = scmp.ge.s32.totalorder %s25_s14, 4   ;;  %s2490_s10 = smov %s2065_s11 }
 0x4ce   : > { %s2491_s11 = smov %s2257_s20  ;;  %s2492_s12 = smov %s2073_s13 }
 0x4cf   : > { %s2493_s13 = smov %s2495_s23  ;;  %24 = sbr.rel (!%p22_p0) target bundleno = 11 (0xb), region = 132 }
 0x4d4   :  { %1447 = vsyncpa [#allocation4], 1 }
 0x4d5   :  { %1449 = vsyncpa [#allocation4 + $0x1], 1 }
 0x4d6   :  { %1450 = vsyncpa [#allocation7], 1 }
 0x4d7   :  { %1452 = vsyncpa [#allocation7 + $0x1], 1 }
 0x4d8   :  { %1453 = vsyncpa [#allocation10], 1 }
 0x4d9   :  { %1454 = vsyncpa [#allocation5], 1 }
 0x4da   :  { %1456 = vsyncpa [#allocation5 + $0x1], 1 }

</bundles_post_ra>
